<compile_context>
chip_gen: v7x
topology: tpu7x:2x2x1
jax: 0.10.0
libtpu: 0.0.40
codegen_flags: <defaults>
</compile_context>

<pallas_src>
import functools

import numpy as np

import jax
import jax.numpy as jnp
from jax.experimental import pallas as pl
from jax.experimental.pallas import tpu as pltpu

_EPS = 1e-5


def _full_spec(shape):
    nd = len(shape)
    return pl.BlockSpec(shape, lambda i, nd=nd: (0,) * nd)


def _fused_kernel(xr_ref, xt_ref, w1_ref, wd_ref, w3_ref, sew1_ref, sew2_ref,
                  vmid_ref, vout_ref, perm_ref, poolexp_ref,
                  out_res_ref, out_tra_ref,
                  *, n, hw, k, cmax, c_res, c_tra):
    inv_s = 1.0 / float(n * hw)

    def col(ref, j):
        # per-channel parameter column (C, 1) -> broadcasts over the lane (spatial) axis
        return ref[:, j:j + 1]

    def bn(v, g, b):
        # training-mode BatchNorm2d (biased batch stats), single sweep: sum + sum-of-squares
        mean = jnp.sum(v, axis=1, keepdims=True) * inv_s
        msq = jnp.sum(v * v, axis=1, keepdims=True) * inv_s
        var = jnp.maximum(msq - mean * mean, 0.0)
        return (v - mean) * (jax.lax.rsqrt(var + _EPS) * g) + b

    def prelu(v, a):
        return jnp.where(v >= 0.0, v, a * v)

    # ---- assemble channel-major activations: (2*Cin, S), S = N*H*W on lanes ----
    xs_r = [xr_ref[i] for i in range(n)]               # each (Cin, HW)
    xs_t = [xt_ref[i] for i in range(n)]
    x = jnp.concatenate([jnp.concatenate(xs_r, axis=-1),
                         jnp.concatenate(xs_t, axis=-1)], axis=0)   # (2*Cin, S)

    # ---- stage 1: batched 1x1 conv (block-diag W^T on the left) -> BN -> PReLU ----
    y = jnp.dot(w1_ref[...], x, preferred_element_type=jnp.float32) + col(vmid_ref, 0)
    y = prelu(bn(y, col(vmid_ref, 1), col(vmid_ref, 2)), col(vmid_ref, 3))   # (4*Cmid, S)

    # ---- stage 2: depthwise k x k conv with reflect padding ----
    # Each tap is a pure lane gather: y @ P_t with P_t a 0/1 permutation built in the
    # wrapper (reflect indexing folded in).  No pad scratch, no sublane re-slicing;
    # per-channel tap weights are tiny per-tap VMEM column loads.
    acc = jnp.zeros_like(y)
    for t in range(k * k):
        gathered = jnp.dot(y, perm_ref[t], preferred_element_type=jnp.float32)
        acc = acc + wd_ref[:, t:t + 1] * gathered
    y2 = acc + col(vmid_ref, 4)
    y2 = prelu(bn(y2, col(vmid_ref, 5), col(vmid_ref, 6)), col(vmid_ref, 7))  # (4*Cmid, S)

    # ---- stage 3: batched 1x1 conv -> BN ----
    y3 = jnp.dot(w3_ref[...], y2, preferred_element_type=jnp.float32) + col(vout_ref, 0)
    y3 = bn(y3, col(vout_ref, 1), col(vout_ref, 2))                           # (4*Cmax, S)

    # ---- squeeze-excitation (global avg pool per image, kept lane-dense) ----
    # poolexp[s, s'] = 1/(H*W) if image(s) == image(s') else 0  -> per-image mean,
    # already broadcast back to every spatial lane.
    pooled = jnp.dot(y3, poolexp_ref[...], preferred_element_type=jnp.float32)  # (4*Cmax, S)
    s1 = jnp.dot(sew1_ref[...], pooled, preferred_element_type=jnp.float32) + col(vmid_ref, 8)
    s1 = prelu(s1, col(vmid_ref, 9))                                            # (4*Cmid, S)
    s2 = jnp.dot(sew2_ref[...], s1, preferred_element_type=jnp.float32) + col(vout_ref, 3)
    out4 = y3 * jax.nn.sigmoid(s2)                                              # (4*Cmax, S)

    # ---- cross-add the four bottlenecks (blocks: 0=res,1=res_x,2=tra,3=tra_x) ----
    # lane-dense stores: last dim is S (multiple of 128 at the demo size)
    out_res_ref[...] = out4[0:c_res, :] + out4[3 * cmax:3 * cmax + c_res, :]
    out_tra_ref[...] = out4[cmax:cmax + c_tra, :] + out4[2 * cmax:2 * cmax + c_tra, :]


def _reflect_index(idx, size):
    idx = np.where(idx < 0, -idx, idx)
    idx = np.where(idx >= size, 2 * (size - 1) - idx, idx)
    return idx


def _build_spatial_constants(n, h, w, k):
    """Per-tap reflect-gather permutations and the pool+broadcast matrix."""
    p = (k - 1) // 2
    hw = h * w
    s = n * hw
    perms = np.zeros((k * k, s, s), np.float32)
    n_idx = np.arange(n)[:, None, None]
    cols = np.arange(s)
    for dy in range(k):
        sh = _reflect_index(np.arange(h) + dy - p, h)[None, :, None]
        for dx in range(k):
            sw = _reflect_index(np.arange(w) + dx - p, w)[None, None, :]
            src = (n_idx * hw + sh * w + sw).reshape(-1)       # source lane per output lane
            perms[dy * k + dx, src, cols] = 1.0                # gathered = y @ P
    img = np.arange(s) // hw
    poolexp = (img[:, None] == img[None, :]).astype(np.float32) / float(hw)   # (s, s)
    return jnp.asarray(perms), jnp.asarray(poolexp)


def resnet_init_forward(x_residual_nchw, x_transient_nchw, packed, *,
                        kernel_size, c_res, c_tra):
    N, Cin, H, W = x_residual_nchw.shape
    # SE avg-pool is a global mean: matches AvgPool2d(feature_size) when H == W == feature_size
    cmid4 = packed["w1"].shape[0]
    cmax4 = packed["w3"].shape[0]
    cmax = cmax4 // 4
    HW = H * W
    S = N * HW

    perm, poolexp = _build_spatial_constants(N, H, W, kernel_size)

    # NCHW -> (N, C, H*W): metadata-only reshape, no extra HBM pass
    xr = x_residual_nchw.reshape(N, Cin, HW)
    xt = x_transient_nchw.reshape(N, Cin, HW)

    args = [xr, xt, packed["w1"], packed["wd"], packed["w3"],
            packed["sew1"], packed["sew2"], packed["vmid"], packed["vout"],
            perm, poolexp]

    out_res, out_tra = pl.pallas_call(
        functools.partial(_fused_kernel, n=N, hw=HW, k=kernel_size,
                          cmax=cmax, c_res=c_res, c_tra=c_tra),
        out_shape=(jax.ShapeDtypeStruct((c_res, S), jnp.float32),
                   jax.ShapeDtypeStruct((c_tra, S), jnp.float32)),
        grid=(1,),
        in_specs=[_full_spec(a.shape) for a in args],
        out_specs=(_full_spec((c_res, S)), _full_spec((c_tra, S))),
        compiler_params=pltpu.CompilerParams(dimension_semantics=("arbitrary",)),
    )(*args)

    # lane-dense (C, N*H*W) kernel outputs -> NCHW (tiny wrapper-side transpose)
    out_res = jnp.transpose(out_res.reshape(c_res, N, H, W), (1, 0, 2, 3))
    out_tra = jnp.transpose(out_tra.reshape(c_tra, N, H, W), (1, 0, 2, 3))
    return out_res, out_tra


def _init_bottleneck_params(key, last_planes, in_planes, out_planes,
                            dense_depth, kernel_size):
    cout = out_planes + dense_depth
    ks = jax.random.split(key, 10)

    def u(k, shape, fan_in):
        bound = 1.0 / (fan_in ** 0.5)
        return jax.random.uniform(k, shape, jnp.float32, -bound, bound)

    return dict(
        # 1x1 conv: torch (Cmid, Cin, 1, 1) stored channel-major as (Cmid, Cin)
        w1=u(ks[0], (in_planes, last_planes), last_planes),
        b1=u(ks[1], (in_planes,), last_planes),
        g1=jnp.ones((in_planes,), jnp.float32),
        be1=jnp.zeros((in_planes,), jnp.float32),
        a1=jnp.float32(0.25),
        # depthwise conv: torch (Cmid, 1, k, k) stored as (Cmid, k*k)
        wd=u(ks[2], (in_planes, kernel_size * kernel_size), kernel_size * kernel_size),
        bd=u(ks[3], (in_planes,), kernel_size * kernel_size),
        g2=jnp.ones((in_planes,), jnp.float32),
        be2=jnp.zeros((in_planes,), jnp.float32),
        a2=jnp.float32(0.25),
        # 1x1 conv to out_planes + dense_depth: (Cout, Cmid)
        w3=u(ks[4], (cout, in_planes), in_planes),
        b3=u(ks[5], (cout,), in_planes),
        g3=jnp.ones((cout,), jnp.float32),
        be3=jnp.zeros((cout,), jnp.float32),
        # SE 1x1 convs: (Cmid, Cout) and (Cout, Cmid)
        sew1=u(ks[6], (in_planes, cout), cout),
        seb1=u(ks[7], (in_planes,), cout),
        ase=jnp.float32(0.25),
        sew2=u(ks[8], (cout, in_planes), in_planes),
        seb2=u(ks[9], (cout,), in_planes),
    )


def pack_resnet_init_params(blocks, last_planes, in_planes, out_planes,
                            dense_depth, kernel_size):
    """blocks order: [residual, residual_across, transient, transient_across]."""
    cmid = in_planes
    cmax = out_planes + dense_depth
    nb = len(blocks)
    c4m, c4o = nb * cmid, nb * cmax

    w1 = jnp.zeros((c4m, 2 * last_planes), jnp.float32)     # (4*Cmid, 2*Cin)  W^T, block-diag-ish
    w3 = jnp.zeros((c4o, c4m), jnp.float32)                  # (4*Cmax, 4*Cmid) block-diag
    sew1 = jnp.zeros((c4m, c4o), jnp.float32)
    sew2 = jnp.zeros((c4o, c4m), jnp.float32)
    for i, b in enumerate(blocks):
        co = b["w3"].shape[0]
        c0 = 0 if i < 2 else last_planes      # blocks 0,1 consume x_residual; 2,3 x_transient
        w1 = w1.at[i * cmid:(i + 1) * cmid, c0:c0 + last_planes].set(b["w1"])
        w3 = w3.at[i * cmax:i * cmax + co, i * cmid:(i + 1) * cmid].set(b["w3"])
        sew1 = sew1.at[i * cmid:(i + 1) * cmid, i * cmax:i * cmax + co].set(b["sew1"])
        sew2 = sew2.at[i * cmax:i * cmax + co, i * cmid:(i + 1) * cmid].set(b["sew2"])
    wd = jnp.concatenate([b["wd"] for b in blocks], axis=0)   # (4*Cmid, k*k)

    def catm(name):
        return jnp.concatenate([b[name] for b in blocks])

    def scalm(name):
        return jnp.concatenate([jnp.full((cmid,), b[name], jnp.float32) for b in blocks])

    def cato(name, pad):
        parts = []
        for b in blocks:
            v = b[name]
            parts.append(jnp.concatenate(
                [v, jnp.full((cmax - v.shape[0],), pad, jnp.float32)]))
        return jnp.concatenate(parts)

    # per-channel parameter COLUMNS (broadcast over lanes in the kernel)
    vmid = jnp.stack([catm("b1"), catm("g1"), catm("be1"), scalm("a1"),
                      catm("bd"), catm("g2"), catm("be2"), scalm("a2"),
                      catm("seb1"), scalm("ase")], axis=1)               # (4*Cmid, 10)
    vout = jnp.stack([cato("b3", 0.0), cato("g3", 1.0), cato("be3", 0.0),
                      cato("seb2", 0.0)], axis=1)                        # (4*Cmax, 4)

    return dict(w1=w1, wd=wd, w3=w3, sew1=sew1, sew2=sew2, vmid=vmid, vout=vout)


if __name__ == "__main__":
    last_planes, in_planes, out_planes = 8, 8, 8
    dense_depth, kernel_size, feature_size = 4, 3, 8
    N, H, W = 2, feature_size, feature_size   # SE avg-pool assumes H == W == feature_size

    key = jax.random.PRNGKey(0)
    k_in1, k_in2, k_p1, k_p2, k_p3, k_p4 = jax.random.split(key, 6)
    x_residual = jax.random.normal(k_in1, (N, last_planes, H, W), jnp.float32)   # NCHW
    x_transient = jax.random.normal(k_in2, (N, last_planes, H, W), jnp.float32)  # NCHW

    blocks = [
        _init_bottleneck_params(k_p1, last_planes, in_planes, out_planes, dense_depth, kernel_size),  # residual
        _init_bottleneck_params(k_p3, last_planes, in_planes, out_planes, 0, kernel_size),            # residual_across
        _init_bottleneck_params(k_p2, last_planes, in_planes, out_planes, 0, kernel_size),            # transient
        _init_bottleneck_params(k_p4, last_planes, in_planes, out_planes, dense_depth, kernel_size),  # transient_across
    ]
    packed = pack_resnet_init_params(blocks, last_planes, in_planes, out_planes,
                                     dense_depth, kernel_size)

    fwd = jax.jit(functools.partial(resnet_init_forward, kernel_size=kernel_size,
                                    c_res=out_planes + dense_depth, c_tra=out_planes))
    out_res, out_tra = fwd(x_residual, x_transient, packed)
    jax.block_until_ready((out_res, out_tra))

    assert out_res.shape == (N, out_planes + dense_depth, H, W)
    assert out_tra.shape == (N, out_planes, H, W)
    assert bool(jnp.all(jnp.isfinite(out_res))) and bool(jnp.all(jnp.isfinite(out_tra)))
    print("KERNEL_OK")
</pallas_src>

<mosaic_0001>
module attributes {stable_mosaic.version = 11 : i64} {
  func.func @_fused_kernel(%arg0: i32, %arg1: memref<2x8x64xf32, #tpu.memory_space<vmem>>, %arg2: memref<2x8x64xf32, #tpu.memory_space<vmem>>, %arg3: memref<32x16xf32, #tpu.memory_space<vmem>>, %arg4: memref<32x9xf32, #tpu.memory_space<vmem>>, %arg5: memref<48x32xf32, #tpu.memory_space<vmem>>, %arg6: memref<32x48xf32, #tpu.memory_space<vmem>>, %arg7: memref<48x32xf32, #tpu.memory_space<vmem>>, %arg8: memref<32x10xf32, #tpu.memory_space<vmem>>, %arg9: memref<48x4xf32, #tpu.memory_space<vmem>>, %arg10: memref<9x128x128xf32, #tpu.memory_space<vmem>>, %arg11: memref<128x128xf32, #tpu.memory_space<vmem>>, %arg12: memref<12x128xf32, #tpu.memory_space<vmem>>, %arg13: memref<8x128xf32, #tpu.memory_space<vmem>>) attributes {dimension_semantics = [#tpu.dimension_semantics<arbitrary>], iteration_bounds = array<i64: 1>, scalar_prefetch = 0 : i64, scratch_operands = 0 : i64, tpu.core_type = #tpu.core_type<tc>, window_params = [{pipeline_mode = #tpu.pipeline_mode<synchronous>, transform_indices = @transform_0, window_bounds = array<i64: 2, 8, 64>}, {pipeline_mode = #tpu.pipeline_mode<synchronous>, transform_indices = @transform_1, window_bounds = array<i64: 2, 8, 64>}, {pipeline_mode = #tpu.pipeline_mode<synchronous>, transform_indices = @transform_2, window_bounds = array<i64: 32, 16>}, {pipeline_mode = #tpu.pipeline_mode<synchronous>, transform_indices = @transform_3, window_bounds = array<i64: 32, 9>}, {pipeline_mode = #tpu.pipeline_mode<synchronous>, transform_indices = @transform_4, window_bounds = array<i64: 48, 32>}, {pipeline_mode = #tpu.pipeline_mode<synchronous>, transform_indices = @transform_5, window_bounds = array<i64: 32, 48>}, {pipeline_mode = #tpu.pipeline_mode<synchronous>, transform_indices = @transform_6, window_bounds = array<i64: 48, 32>}, {pipeline_mode = #tpu.pipeline_mode<synchronous>, transform_indices = @transform_7, window_bounds = array<i64: 32, 10>}, {pipeline_mode = #tpu.pipeline_mode<synchronous>, transform_indices = @transform_8, window_bounds = array<i64: 48, 4>}, {pipeline_mode = #tpu.pipeline_mode<synchronous>, transform_indices = @transform_9, window_bounds = array<i64: 9, 128, 128>}, {pipeline_mode = #tpu.pipeline_mode<synchronous>, transform_indices = @transform_10, window_bounds = array<i64: 128, 128>}, {pipeline_mode = #tpu.pipeline_mode<synchronous>, transform_indices = @transform_11, window_bounds = array<i64: 12, 128>}, {pipeline_mode = #tpu.pipeline_mode<synchronous>, transform_indices = @transform_12, window_bounds = array<i64: 8, 128>}]} {
    %c0 = arith.constant 0 : index
    %c0_0 = arith.constant 0 : index
    %c0_1 = arith.constant 0 : index
    %0 = vector.load %arg1[%c0, %c0_0, %c0_1] : memref<2x8x64xf32, #tpu.memory_space<vmem>>, vector<1x8x64xf32>
    %1 = vector.shape_cast %0 : vector<1x8x64xf32> to vector<8x64xf32>
    %c1 = arith.constant 1 : index
    %c0_2 = arith.constant 0 : index
    %c0_3 = arith.constant 0 : index
    %2 = vector.load %arg1[%c1, %c0_2, %c0_3] : memref<2x8x64xf32, #tpu.memory_space<vmem>>, vector<1x8x64xf32>
    %3 = vector.shape_cast %2 : vector<1x8x64xf32> to vector<8x64xf32>
    %c0_4 = arith.constant 0 : index
    %c0_5 = arith.constant 0 : index
    %c0_6 = arith.constant 0 : index
    %4 = vector.load %arg2[%c0_4, %c0_5, %c0_6] : memref<2x8x64xf32, #tpu.memory_space<vmem>>, vector<1x8x64xf32>
    %5 = vector.shape_cast %4 : vector<1x8x64xf32> to vector<8x64xf32>
    %c1_7 = arith.constant 1 : index
    %c0_8 = arith.constant 0 : index
    %c0_9 = arith.constant 0 : index
    %6 = vector.load %arg2[%c1_7, %c0_8, %c0_9] : memref<2x8x64xf32, #tpu.memory_space<vmem>>, vector<1x8x64xf32>
    %7 = vector.shape_cast %6 : vector<1x8x64xf32> to vector<8x64xf32>
    %8 = tpu.concatenate %1, %3 in 1 : vector<8x64xf32>, vector<8x64xf32> -> vector<8x128xf32>
    %9 = tpu.concatenate %5, %7 in 1 : vector<8x64xf32>, vector<8x64xf32> -> vector<8x128xf32>
    %10 = tpu.concatenate %8, %9 in 0 : vector<8x128xf32>, vector<8x128xf32> -> vector<16x128xf32>
    %c0_10 = arith.constant 0 : index
    %c0_11 = arith.constant 0 : index
    %11 = vector.load %arg3[%c0_10, %c0_11] : memref<32x16xf32, #tpu.memory_space<vmem>>, vector<32x16xf32>
    %cst = arith.constant dense<0.000000e+00> : vector<32x128xf32>
    %12 = tpu.matmul %11, %10, %cst {dimension_numbers = #tpu.dot_dimension_numbers<[1], [0], [0], [1], [0, 0, 1, 1], [], []>} : vector<32x16xf32>, vector<16x128xf32>, vector<32x128xf32> -> vector<32x128xf32>
    %c0_12 = arith.constant 0 : index
    %c0_13 = arith.constant 0 : index
    %13 = vector.load %arg8[%c0_12, %c0_13] : memref<32x10xf32, #tpu.memory_space<vmem>>, vector<32x1xf32>
    %14 = vector.broadcast %13 : vector<32x1xf32> to vector<32x128xf32>
    %15 = arith.addf %12, %14 : vector<32x128xf32>
    %c0_14 = arith.constant 0 : index
    %c1_15 = arith.constant 1 : index
    %16 = vector.load %arg8[%c0_14, %c1_15] : memref<32x10xf32, #tpu.memory_space<vmem>>, vector<32x1xf32>
    %c0_16 = arith.constant 0 : index
    %c2 = arith.constant 2 : index
    %17 = vector.load %arg8[%c0_16, %c2] : memref<32x10xf32, #tpu.memory_space<vmem>>, vector<32x1xf32>
    %cst_17 = arith.constant dense<0.000000e+00> : vector<32xf32>
    %18 = vector.multi_reduction <add>, %15, %cst_17 [1] : vector<32x128xf32> to vector<32xf32>
    %19 = vector.shape_cast %18 : vector<32xf32> to vector<32x1xf32>
    %cst_18 = arith.constant 7.812500e-03 : f32
    %20 = vector.broadcast %cst_18 : f32 to vector<32x1xf32>
    %21 = arith.mulf %19, %20 : vector<32x1xf32>
    %22 = arith.mulf %15, %15 : vector<32x128xf32>
    %cst_19 = arith.constant dense<0.000000e+00> : vector<32xf32>
    %23 = vector.multi_reduction <add>, %22, %cst_19 [1] : vector<32x128xf32> to vector<32xf32>
    %24 = vector.shape_cast %23 : vector<32xf32> to vector<32x1xf32>
    %cst_20 = arith.constant 7.812500e-03 : f32
    %25 = vector.broadcast %cst_20 : f32 to vector<32x1xf32>
    %26 = arith.mulf %24, %25 : vector<32x1xf32>
    %27 = arith.mulf %21, %21 : vector<32x1xf32>
    %28 = arith.subf %26, %27 : vector<32x1xf32>
    %cst_21 = arith.constant 0.000000e+00 : f32
    %29 = vector.broadcast %cst_21 : f32 to vector<32x1xf32>
    %30 = arith.maximumf %28, %29 : vector<32x1xf32>
    %31 = vector.broadcast %21 : vector<32x1xf32> to vector<32x128xf32>
    %32 = arith.subf %15, %31 : vector<32x128xf32>
    %cst_22 = arith.constant 9.99999974E-6 : f32
    %33 = vector.broadcast %cst_22 : f32 to vector<32x1xf32>
    %34 = arith.addf %30, %33 : vector<32x1xf32>
    %35 = math.rsqrt %34 : vector<32x1xf32>
    %36 = arith.mulf %35, %16 : vector<32x1xf32>
    %37 = vector.broadcast %36 : vector<32x1xf32> to vector<32x128xf32>
    %38 = arith.mulf %32, %37 : vector<32x128xf32>
    %39 = vector.broadcast %17 : vector<32x1xf32> to vector<32x128xf32>
    %40 = arith.addf %38, %39 : vector<32x128xf32>
    %c0_23 = arith.constant 0 : index
    %c3 = arith.constant 3 : index
    %41 = vector.load %arg8[%c0_23, %c3] : memref<32x10xf32, #tpu.memory_space<vmem>>, vector<32x1xf32>
    %cst_24 = arith.constant 0.000000e+00 : f32
    %42 = vector.broadcast %cst_24 : f32 to vector<32x128xf32>
    %43 = arith.cmpf oge, %40, %42 : vector<32x128xf32>
    %44 = vector.broadcast %41 : vector<32x1xf32> to vector<32x128xf32>
    %45 = arith.mulf %44, %40 : vector<32x128xf32>
    %46 = arith.select %43, %40, %45 : vector<32x128xi1>, vector<32x128xf32>
    %cst_25 = arith.constant 0.000000e+00 : f32
    %47 = vector.broadcast %cst_25 : f32 to vector<32x128xf32>
    %c0_26 = arith.constant 0 : index
    %c0_27 = arith.constant 0 : index
    %c0_28 = arith.constant 0 : index
    %48 = vector.load %arg10[%c0_26, %c0_27, %c0_28] : memref<9x128x128xf32, #tpu.memory_space<vmem>>, vector<1x128x128xf32>
    %49 = vector.shape_cast %48 : vector<1x128x128xf32> to vector<128x128xf32>
    %cst_29 = arith.constant dense<0.000000e+00> : vector<32x128xf32>
    %50 = tpu.matmul %46, %49, %cst_29 {dimension_numbers = #tpu.dot_dimension_numbers<[1], [0], [0], [1], [0, 0, 1, 1], [], []>} : vector<32x128xf32>, vector<128x128xf32>, vector<32x128xf32> -> vector<32x128xf32>
    %c0_30 = arith.constant 0 : index
    %c0_31 = arith.constant 0 : index
    %51 = vector.load %arg4[%c0_30, %c0_31] : memref<32x9xf32, #tpu.memory_space<vmem>>, vector<32x1xf32>
    %52 = vector.broadcast %51 : vector<32x1xf32> to vector<32x128xf32>
    %53 = arith.mulf %52, %50 : vector<32x128xf32>
    %54 = arith.addf %47, %53 : vector<32x128xf32>
    %c1_32 = arith.constant 1 : index
    %c0_33 = arith.constant 0 : index
    %c0_34 = arith.constant 0 : index
    %55 = vector.load %arg10[%c1_32, %c0_33, %c0_34] : memref<9x128x128xf32, #tpu.memory_space<vmem>>, vector<1x128x128xf32>
    %56 = vector.shape_cast %55 : vector<1x128x128xf32> to vector<128x128xf32>
    %cst_35 = arith.constant dense<0.000000e+00> : vector<32x128xf32>
    %57 = tpu.matmul %46, %56, %cst_35 {dimension_numbers = #tpu.dot_dimension_numbers<[1], [0], [0], [1], [0, 0, 1, 1], [], []>} : vector<32x128xf32>, vector<128x128xf32>, vector<32x128xf32> -> vector<32x128xf32>
    %c0_36 = arith.constant 0 : index
    %c1_37 = arith.constant 1 : index
    %58 = vector.load %arg4[%c0_36, %c1_37] : memref<32x9xf32, #tpu.memory_space<vmem>>, vector<32x1xf32>
    %59 = vector.broadcast %58 : vector<32x1xf32> to vector<32x128xf32>
    %60 = arith.mulf %59, %57 : vector<32x128xf32>
    %61 = arith.addf %54, %60 : vector<32x128xf32>
    %c2_38 = arith.constant 2 : index
    %c0_39 = arith.constant 0 : index
    %c0_40 = arith.constant 0 : index
    %62 = vector.load %arg10[%c2_38, %c0_39, %c0_40] : memref<9x128x128xf32, #tpu.memory_space<vmem>>, vector<1x128x128xf32>
    %63 = vector.shape_cast %62 : vector<1x128x128xf32> to vector<128x128xf32>
    %cst_41 = arith.constant dense<0.000000e+00> : vector<32x128xf32>
    %64 = tpu.matmul %46, %63, %cst_41 {dimension_numbers = #tpu.dot_dimension_numbers<[1], [0], [0], [1], [0, 0, 1, 1], [], []>} : vector<32x128xf32>, vector<128x128xf32>, vector<32x128xf32> -> vector<32x128xf32>
    %c0_42 = arith.constant 0 : index
    %c2_43 = arith.constant 2 : index
    %65 = vector.load %arg4[%c0_42, %c2_43] : memref<32x9xf32, #tpu.memory_space<vmem>>, vector<32x1xf32>
    %66 = vector.broadcast %65 : vector<32x1xf32> to vector<32x128xf32>
    %67 = arith.mulf %66, %64 : vector<32x128xf32>
    %68 = arith.addf %61, %67 : vector<32x128xf32>
    %c3_44 = arith.constant 3 : index
    %c0_45 = arith.constant 0 : index
    %c0_46 = arith.constant 0 : index
    %69 = vector.load %arg10[%c3_44, %c0_45, %c0_46] : memref<9x128x128xf32, #tpu.memory_space<vmem>>, vector<1x128x128xf32>
    %70 = vector.shape_cast %69 : vector<1x128x128xf32> to vector<128x128xf32>
    %cst_47 = arith.constant dense<0.000000e+00> : vector<32x128xf32>
    %71 = tpu.matmul %46, %70, %cst_47 {dimension_numbers = #tpu.dot_dimension_numbers<[1], [0], [0], [1], [0, 0, 1, 1], [], []>} : vector<32x128xf32>, vector<128x128xf32>, vector<32x128xf32> -> vector<32x128xf32>
    %c0_48 = arith.constant 0 : index
    %c3_49 = arith.constant 3 : index
    %72 = vector.load %arg4[%c0_48, %c3_49] : memref<32x9xf32, #tpu.memory_space<vmem>>, vector<32x1xf32>
    %73 = vector.broadcast %72 : vector<32x1xf32> to vector<32x128xf32>
    %74 = arith.mulf %73, %71 : vector<32x128xf32>
    %75 = arith.addf %68, %74 : vector<32x128xf32>
    %c4 = arith.constant 4 : index
    %c0_50 = arith.constant 0 : index
    %c0_51 = arith.constant 0 : index
    %76 = vector.load %arg10[%c4, %c0_50, %c0_51] : memref<9x128x128xf32, #tpu.memory_space<vmem>>, vector<1x128x128xf32>
    %77 = vector.shape_cast %76 : vector<1x128x128xf32> to vector<128x128xf32>
    %cst_52 = arith.constant dense<0.000000e+00> : vector<32x128xf32>
    %78 = tpu.matmul %46, %77, %cst_52 {dimension_numbers = #tpu.dot_dimension_numbers<[1], [0], [0], [1], [0, 0, 1, 1], [], []>} : vector<32x128xf32>, vector<128x128xf32>, vector<32x128xf32> -> vector<32x128xf32>
    %c0_53 = arith.constant 0 : index
    %c4_54 = arith.constant 4 : index
    %79 = vector.load %arg4[%c0_53, %c4_54] : memref<32x9xf32, #tpu.memory_space<vmem>>, vector<32x1xf32>
    %80 = vector.broadcast %79 : vector<32x1xf32> to vector<32x128xf32>
    %81 = arith.mulf %80, %78 : vector<32x128xf32>
    %82 = arith.addf %75, %81 : vector<32x128xf32>
    %c5 = arith.constant 5 : index
    %c0_55 = arith.constant 0 : index
    %c0_56 = arith.constant 0 : index
    %83 = vector.load %arg10[%c5, %c0_55, %c0_56] : memref<9x128x128xf32, #tpu.memory_space<vmem>>, vector<1x128x128xf32>
    %84 = vector.shape_cast %83 : vector<1x128x128xf32> to vector<128x128xf32>
    %cst_57 = arith.constant dense<0.000000e+00> : vector<32x128xf32>
    %85 = tpu.matmul %46, %84, %cst_57 {dimension_numbers = #tpu.dot_dimension_numbers<[1], [0], [0], [1], [0, 0, 1, 1], [], []>} : vector<32x128xf32>, vector<128x128xf32>, vector<32x128xf32> -> vector<32x128xf32>
    %c0_58 = arith.constant 0 : index
    %c5_59 = arith.constant 5 : index
    %86 = vector.load %arg4[%c0_58, %c5_59] : memref<32x9xf32, #tpu.memory_space<vmem>>, vector<32x1xf32>
    %87 = vector.broadcast %86 : vector<32x1xf32> to vector<32x128xf32>
    %88 = arith.mulf %87, %85 : vector<32x128xf32>
    %89 = arith.addf %82, %88 : vector<32x128xf32>
    %c6 = arith.constant 6 : index
    %c0_60 = arith.constant 0 : index
    %c0_61 = arith.constant 0 : index
    %90 = vector.load %arg10[%c6, %c0_60, %c0_61] : memref<9x128x128xf32, #tpu.memory_space<vmem>>, vector<1x128x128xf32>
    %91 = vector.shape_cast %90 : vector<1x128x128xf32> to vector<128x128xf32>
    %cst_62 = arith.constant dense<0.000000e+00> : vector<32x128xf32>
    %92 = tpu.matmul %46, %91, %cst_62 {dimension_numbers = #tpu.dot_dimension_numbers<[1], [0], [0], [1], [0, 0, 1, 1], [], []>} : vector<32x128xf32>, vector<128x128xf32>, vector<32x128xf32> -> vector<32x128xf32>
    %c0_63 = arith.constant 0 : index
    %c6_64 = arith.constant 6 : index
    %93 = vector.load %arg4[%c0_63, %c6_64] : memref<32x9xf32, #tpu.memory_space<vmem>>, vector<32x1xf32>
    %94 = vector.broadcast %93 : vector<32x1xf32> to vector<32x128xf32>
    %95 = arith.mulf %94, %92 : vector<32x128xf32>
    %96 = arith.addf %89, %95 : vector<32x128xf32>
    %c7 = arith.constant 7 : index
    %c0_65 = arith.constant 0 : index
    %c0_66 = arith.constant 0 : index
    %97 = vector.load %arg10[%c7, %c0_65, %c0_66] : memref<9x128x128xf32, #tpu.memory_space<vmem>>, vector<1x128x128xf32>
    %98 = vector.shape_cast %97 : vector<1x128x128xf32> to vector<128x128xf32>
    %cst_67 = arith.constant dense<0.000000e+00> : vector<32x128xf32>
    %99 = tpu.matmul %46, %98, %cst_67 {dimension_numbers = #tpu.dot_dimension_numbers<[1], [0], [0], [1], [0, 0, 1, 1], [], []>} : vector<32x128xf32>, vector<128x128xf32>, vector<32x128xf32> -> vector<32x128xf32>
    %c0_68 = arith.constant 0 : index
    %c7_69 = arith.constant 7 : index
    %100 = vector.load %arg4[%c0_68, %c7_69] : memref<32x9xf32, #tpu.memory_space<vmem>>, vector<32x1xf32>
    %101 = vector.broadcast %100 : vector<32x1xf32> to vector<32x128xf32>
    %102 = arith.mulf %101, %99 : vector<32x128xf32>
    %103 = arith.addf %96, %102 : vector<32x128xf32>
    %c8 = arith.constant 8 : index
    %c0_70 = arith.constant 0 : index
    %c0_71 = arith.constant 0 : index
    %104 = vector.load %arg10[%c8, %c0_70, %c0_71] : memref<9x128x128xf32, #tpu.memory_space<vmem>>, vector<1x128x128xf32>
    %105 = vector.shape_cast %104 : vector<1x128x128xf32> to vector<128x128xf32>
    %cst_72 = arith.constant dense<0.000000e+00> : vector<32x128xf32>
    %106 = tpu.matmul %46, %105, %cst_72 {dimension_numbers = #tpu.dot_dimension_numbers<[1], [0], [0], [1], [0, 0, 1, 1], [], []>} : vector<32x128xf32>, vector<128x128xf32>, vector<32x128xf32> -> vector<32x128xf32>
    %c0_73 = arith.constant 0 : index
    %c8_74 = arith.constant 8 : index
    %107 = vector.load %arg4[%c0_73, %c8_74] : memref<32x9xf32, #tpu.memory_space<vmem>>, vector<32x1xf32>
    %108 = vector.broadcast %107 : vector<32x1xf32> to vector<32x128xf32>
    %109 = arith.mulf %108, %106 : vector<32x128xf32>
    %110 = arith.addf %103, %109 : vector<32x128xf32>
    %c0_75 = arith.constant 0 : index
    %c4_76 = arith.constant 4 : index
    %111 = vector.load %arg8[%c0_75, %c4_76] : memref<32x10xf32, #tpu.memory_space<vmem>>, vector<32x1xf32>
    %112 = vector.broadcast %111 : vector<32x1xf32> to vector<32x128xf32>
    %113 = arith.addf %110, %112 : vector<32x128xf32>
    %c0_77 = arith.constant 0 : index
    %c5_78 = arith.constant 5 : index
    %114 = vector.load %arg8[%c0_77, %c5_78] : memref<32x10xf32, #tpu.memory_space<vmem>>, vector<32x1xf32>
    %c0_79 = arith.constant 0 : index
    %c6_80 = arith.constant 6 : index
    %115 = vector.load %arg8[%c0_79, %c6_80] : memref<32x10xf32, #tpu.memory_space<vmem>>, vector<32x1xf32>
    %cst_81 = arith.constant dense<0.000000e+00> : vector<32xf32>
    %116 = vector.multi_reduction <add>, %113, %cst_81 [1] : vector<32x128xf32> to vector<32xf32>
    %117 = vector.shape_cast %116 : vector<32xf32> to vector<32x1xf32>
    %cst_82 = arith.constant 7.812500e-03 : f32
    %118 = vector.broadcast %cst_82 : f32 to vector<32x1xf32>
    %119 = arith.mulf %117, %118 : vector<32x1xf32>
    %120 = arith.mulf %113, %113 : vector<32x128xf32>
    %cst_83 = arith.constant dense<0.000000e+00> : vector<32xf32>
    %121 = vector.multi_reduction <add>, %120, %cst_83 [1] : vector<32x128xf32> to vector<32xf32>
    %122 = vector.shape_cast %121 : vector<32xf32> to vector<32x1xf32>
    %cst_84 = arith.constant 7.812500e-03 : f32
    %123 = vector.broadcast %cst_84 : f32 to vector<32x1xf32>
    %124 = arith.mulf %122, %123 : vector<32x1xf32>
    %125 = arith.mulf %119, %119 : vector<32x1xf32>
    %126 = arith.subf %124, %125 : vector<32x1xf32>
    %cst_85 = arith.constant 0.000000e+00 : f32
    %127 = vector.broadcast %cst_85 : f32 to vector<32x1xf32>
    %128 = arith.maximumf %126, %127 : vector<32x1xf32>
    %129 = vector.broadcast %119 : vector<32x1xf32> to vector<32x128xf32>
    %130 = arith.subf %113, %129 : vector<32x128xf32>
    %cst_86 = arith.constant 9.99999974E-6 : f32
    %131 = vector.broadcast %cst_86 : f32 to vector<32x1xf32>
    %132 = arith.addf %128, %131 : vector<32x1xf32>
    %133 = math.rsqrt %132 : vector<32x1xf32>
    %134 = arith.mulf %133, %114 : vector<32x1xf32>
    %135 = vector.broadcast %134 : vector<32x1xf32> to vector<32x128xf32>
    %136 = arith.mulf %130, %135 : vector<32x128xf32>
    %137 = vector.broadcast %115 : vector<32x1xf32> to vector<32x128xf32>
    %138 = arith.addf %136, %137 : vector<32x128xf32>
    %c0_87 = arith.constant 0 : index
    %c7_88 = arith.constant 7 : index
    %139 = vector.load %arg8[%c0_87, %c7_88] : memref<32x10xf32, #tpu.memory_space<vmem>>, vector<32x1xf32>
    %cst_89 = arith.constant 0.000000e+00 : f32
    %140 = vector.broadcast %cst_89 : f32 to vector<32x128xf32>
    %141 = arith.cmpf oge, %138, %140 : vector<32x128xf32>
    %142 = vector.broadcast %139 : vector<32x1xf32> to vector<32x128xf32>
    %143 = arith.mulf %142, %138 : vector<32x128xf32>
    %144 = arith.select %141, %138, %143 : vector<32x128xi1>, vector<32x128xf32>
    %c0_90 = arith.constant 0 : index
    %c0_91 = arith.constant 0 : index
    %145 = vector.load %arg5[%c0_90, %c0_91] : memref<48x32xf32, #tpu.memory_space<vmem>>, vector<48x32xf32>
    %cst_92 = arith.constant dense<0.000000e+00> : vector<48x128xf32>
    %146 = tpu.matmul %145, %144, %cst_92 {dimension_numbers = #tpu.dot_dimension_numbers<[1], [0], [0], [1], [0, 0, 1, 1], [], []>} : vector<48x32xf32>, vector<32x128xf32>, vector<48x128xf32> -> vector<48x128xf32>
    %c0_93 = arith.constant 0 : index
    %c0_94 = arith.constant 0 : index
    %147 = vector.load %arg9[%c0_93, %c0_94] : memref<48x4xf32, #tpu.memory_space<vmem>>, vector<48x1xf32>
    %148 = vector.broadcast %147 : vector<48x1xf32> to vector<48x128xf32>
    %149 = arith.addf %146, %148 : vector<48x128xf32>
    %c0_95 = arith.constant 0 : index
    %c1_96 = arith.constant 1 : index
    %150 = vector.load %arg9[%c0_95, %c1_96] : memref<48x4xf32, #tpu.memory_space<vmem>>, vector<48x1xf32>
    %c0_97 = arith.constant 0 : index
    %c2_98 = arith.constant 2 : index
    %151 = vector.load %arg9[%c0_97, %c2_98] : memref<48x4xf32, #tpu.memory_space<vmem>>, vector<48x1xf32>
    %cst_99 = arith.constant dense<0.000000e+00> : vector<48xf32>
    %152 = vector.multi_reduction <add>, %149, %cst_99 [1] : vector<48x128xf32> to vector<48xf32>
    %153 = vector.shape_cast %152 : vector<48xf32> to vector<48x1xf32>
    %cst_100 = arith.constant 7.812500e-03 : f32
    %154 = vector.broadcast %cst_100 : f32 to vector<48x1xf32>
    %155 = arith.mulf %153, %154 : vector<48x1xf32>
    %156 = arith.mulf %149, %149 : vector<48x128xf32>
    %cst_101 = arith.constant dense<0.000000e+00> : vector<48xf32>
    %157 = vector.multi_reduction <add>, %156, %cst_101 [1] : vector<48x128xf32> to vector<48xf32>
    %158 = vector.shape_cast %157 : vector<48xf32> to vector<48x1xf32>
    %cst_102 = arith.constant 7.812500e-03 : f32
    %159 = vector.broadcast %cst_102 : f32 to vector<48x1xf32>
    %160 = arith.mulf %158, %159 : vector<48x1xf32>
    %161 = arith.mulf %155, %155 : vector<48x1xf32>
    %162 = arith.subf %160, %161 : vector<48x1xf32>
    %cst_103 = arith.constant 0.000000e+00 : f32
    %163 = vector.broadcast %cst_103 : f32 to vector<48x1xf32>
    %164 = arith.maximumf %162, %163 : vector<48x1xf32>
    %165 = vector.broadcast %155 : vector<48x1xf32> to vector<48x128xf32>
    %166 = arith.subf %149, %165 : vector<48x128xf32>
    %cst_104 = arith.constant 9.99999974E-6 : f32
    %167 = vector.broadcast %cst_104 : f32 to vector<48x1xf32>
    %168 = arith.addf %164, %167 : vector<48x1xf32>
    %169 = math.rsqrt %168 : vector<48x1xf32>
    %170 = arith.mulf %169, %150 : vector<48x1xf32>
    %171 = vector.broadcast %170 : vector<48x1xf32> to vector<48x128xf32>
    %172 = arith.mulf %166, %171 : vector<48x128xf32>
    %173 = vector.broadcast %151 : vector<48x1xf32> to vector<48x128xf32>
    %174 = arith.addf %172, %173 : vector<48x128xf32>
    %c0_105 = arith.constant 0 : index
    %c0_106 = arith.constant 0 : index
    %175 = vector.load %arg11[%c0_105, %c0_106] : memref<128x128xf32, #tpu.memory_space<vmem>>, vector<128x128xf32>
    %cst_107 = arith.constant dense<0.000000e+00> : vector<48x128xf32>
    %176 = tpu.matmul %174, %175, %cst_107 {dimension_numbers = #tpu.dot_dimension_numbers<[1], [0], [0], [1], [0, 0, 1, 1], [], []>} : vector<48x128xf32>, vector<128x128xf32>, vector<48x128xf32> -> vector<48x128xf32>
    %c0_108 = arith.constant 0 : index
    %c0_109 = arith.constant 0 : index
    %177 = vector.load %arg6[%c0_108, %c0_109] : memref<32x48xf32, #tpu.memory_space<vmem>>, vector<32x48xf32>
    %cst_110 = arith.constant dense<0.000000e+00> : vector<32x128xf32>
    %178 = tpu.matmul %177, %176, %cst_110 {dimension_numbers = #tpu.dot_dimension_numbers<[1], [0], [0], [1], [0, 0, 1, 1], [], []>} : vector<32x48xf32>, vector<48x128xf32>, vector<32x128xf32> -> vector<32x128xf32>
    %c0_111 = arith.constant 0 : index
    %c8_112 = arith.constant 8 : index
    %179 = vector.load %arg8[%c0_111, %c8_112] : memref<32x10xf32, #tpu.memory_space<vmem>>, vector<32x1xf32>
    %180 = vector.broadcast %179 : vector<32x1xf32> to vector<32x128xf32>
    %181 = arith.addf %178, %180 : vector<32x128xf32>
    %c0_113 = arith.constant 0 : index
    %c9 = arith.constant 9 : index
    %182 = vector.load %arg8[%c0_113, %c9] : memref<32x10xf32, #tpu.memory_space<vmem>>, vector<32x1xf32>
    %cst_114 = arith.constant 0.000000e+00 : f32
    %183 = vector.broadcast %cst_114 : f32 to vector<32x128xf32>
    %184 = arith.cmpf oge, %181, %183 : vector<32x128xf32>
    %185 = vector.broadcast %182 : vector<32x1xf32> to vector<32x128xf32>
    %186 = arith.mulf %185, %181 : vector<32x128xf32>
    %187 = arith.select %184, %181, %186 : vector<32x128xi1>, vector<32x128xf32>
    %c0_115 = arith.constant 0 : index
    %c0_116 = arith.constant 0 : index
    %188 = vector.load %arg7[%c0_115, %c0_116] : memref<48x32xf32, #tpu.memory_space<vmem>>, vector<48x32xf32>
    %cst_117 = arith.constant dense<0.000000e+00> : vector<48x128xf32>
    %189 = tpu.matmul %188, %187, %cst_117 {dimension_numbers = #tpu.dot_dimension_numbers<[1], [0], [0], [1], [0, 0, 1, 1], [], []>} : vector<48x32xf32>, vector<32x128xf32>, vector<48x128xf32> -> vector<48x128xf32>
    %c0_118 = arith.constant 0 : index
    %c3_119 = arith.constant 3 : index
    %190 = vector.load %arg9[%c0_118, %c3_119] : memref<48x4xf32, #tpu.memory_space<vmem>>, vector<48x1xf32>
    %191 = vector.broadcast %190 : vector<48x1xf32> to vector<48x128xf32>
    %192 = arith.addf %189, %191 : vector<48x128xf32>
    %193 = arith.negf %192 : vector<48x128xf32>
    %194 = math.exp %193 : vector<48x128xf32>
    %cst_120 = arith.constant 1.000000e+00 : f32
    %195 = vector.broadcast %cst_120 : f32 to vector<48x128xf32>
    %196 = arith.addf %195, %194 : vector<48x128xf32>
    %197 = arith.divf %195, %196 : vector<48x128xf32>
    %198 = arith.mulf %174, %197 : vector<48x128xf32>
    %199 = vector.extract_strided_slice %198 {offsets = [0, 0], sizes = [12, 128], strides = [1, 1]} : vector<48x128xf32> to vector<12x128xf32>
    %200 = vector.extract_strided_slice %198 {offsets = [36, 0], sizes = [12, 128], strides = [1, 1]} : vector<48x128xf32> to vector<12x128xf32>
    %201 = arith.addf %199, %200 : vector<12x128xf32>
    %c0_121 = arith.constant 0 : index
    %c0_122 = arith.constant 0 : index
    %202 = vector.load %arg12[%c0_121, %c0_122] : memref<12x128xf32, #tpu.memory_space<vmem>>, vector<12x128xf32>
    tpu.vector_store %arg12[%c0_121, %c0_122], %201 {strides = array<i32>} : memref<12x128xf32, #tpu.memory_space<vmem>>, vector<12x128xf32>,
    %203 = vector.extract_strided_slice %198 {offsets = [12, 0], sizes = [8, 128], strides = [1, 1]} : vector<48x128xf32> to vector<8x128xf32>
    %204 = vector.extract_strided_slice %198 {offsets = [24, 0], sizes = [8, 128], strides = [1, 1]} : vector<48x128xf32> to vector<8x128xf32>
    %205 = arith.addf %203, %204 : vector<8x128xf32>
    %c0_123 = arith.constant 0 : index
    %c0_124 = arith.constant 0 : index
    %206 = vector.load %arg13[%c0_123, %c0_124] : memref<8x128xf32, #tpu.memory_space<vmem>>, vector<8x128xf32>
    tpu.vector_store %arg13[%c0_123, %c0_124], %205 {strides = array<i32>} : memref<8x128xf32, #tpu.memory_space<vmem>>, vector<8x128xf32>,
    return
  }
  func.func @transform_0(%arg0: i32) -> (i32, i32, i32) {
    %c0_i32 = arith.constant 0 : i32
    %c0_i32_0 = arith.constant 0 : i32
    %c0_i32_1 = arith.constant 0 : i32
    %c0_i32_2 = arith.constant 0 : i32
    return %c0_i32, %c0_i32_0, %c0_i32_1 : i32, i32, i32
  }
  func.func @transform_1(%arg0: i32) -> (i32, i32, i32) {
    %c0_i32 = arith.constant 0 : i32
    %c0_i32_0 = arith.constant 0 : i32
    %c0_i32_1 = arith.constant 0 : i32
    %c0_i32_2 = arith.constant 0 : i32
    return %c0_i32, %c0_i32_0, %c0_i32_1 : i32, i32, i32
  }
  func.func @transform_2(%arg0: i32) -> (i32, i32) {
    %c0_i32 = arith.constant 0 : i32
    %c0_i32_0 = arith.constant 0 : i32
    %c0_i32_1 = arith.constant 0 : i32
    return %c0_i32, %c0_i32_0 : i32, i32
  }
  func.func @transform_3(%arg0: i32) -> (i32, i32) {
    %c0_i32 = arith.constant 0 : i32
    %c0_i32_0 = arith.constant 0 : i32
    %c0_i32_1 = arith.constant 0 : i32
    return %c0_i32, %c0_i32_0 : i32, i32
  }
  func.func @transform_4(%arg0: i32) -> (i32, i32) {
    %c0_i32 = arith.constant 0 : i32
    %c0_i32_0 = arith.constant 0 : i32
    %c0_i32_1 = arith.constant 0 : i32
    return %c0_i32, %c0_i32_0 : i32, i32
  }
  func.func @transform_5(%arg0: i32) -> (i32, i32) {
    %c0_i32 = arith.constant 0 : i32
    %c0_i32_0 = arith.constant 0 : i32
    %c0_i32_1 = arith.constant 0 : i32
    return %c0_i32, %c0_i32_0 : i32, i32
  }
  func.func @transform_6(%arg0: i32) -> (i32, i32) {
    %c0_i32 = arith.constant 0 : i32
    %c0_i32_0 = arith.constant 0 : i32
    %c0_i32_1 = arith.constant 0 : i32
    return %c0_i32, %c0_i32_0 : i32, i32
  }
  func.func @transform_7(%arg0: i32) -> (i32, i32) {
    %c0_i32 = arith.constant 0 : i32
    %c0_i32_0 = arith.constant 0 : i32
    %c0_i32_1 = arith.constant 0 : i32
    return %c0_i32, %c0_i32_0 : i32, i32
  }
  func.func @transform_8(%arg0: i32) -> (i32, i32) {
    %c0_i32 = arith.constant 0 : i32
    %c0_i32_0 = arith.constant 0 : i32
    %c0_i32_1 = arith.constant 0 : i32
    return %c0_i32, %c0_i32_0 : i32, i32
  }
  func.func @transform_9(%arg0: i32) -> (i32, i32, i32) {
    %c0_i32 = arith.constant 0 : i32
    %c0_i32_0 = arith.constant 0 : i32
    %c0_i32_1 = arith.constant 0 : i32
    %c0_i32_2 = arith.constant 0 : i32
    return %c0_i32, %c0_i32_0, %c0_i32_1 : i32, i32, i32
  }
  func.func @transform_10(%arg0: i32) -> (i32, i32) {
    %c0_i32 = arith.constant 0 : i32
    %c0_i32_0 = arith.constant 0 : i32
    %c0_i32_1 = arith.constant 0 : i32
    return %c0_i32, %c0_i32_0 : i32, i32
  }
  func.func @transform_11(%arg0: i32) -> (i32, i32) {
    %c0_i32 = arith.constant 0 : i32
    %c0_i32_0 = arith.constant 0 : i32
    %c0_i32_1 = arith.constant 0 : i32
    return %c0_i32, %c0_i32_0 : i32, i32
  }
  func.func @transform_12(%arg0: i32) -> (i32, i32) {
    %c0_i32 = arith.constant 0 : i32
    %c0_i32_0 = arith.constant 0 : i32
    %c0_i32_1 = arith.constant 0 : i32
    return %c0_i32, %c0_i32_0 : i32, i32
  }
}

</mosaic_0001>

<bundles_post_ra>
// kernel: resnet_init_forward.1
= control target key start
LH: loop header
LB: loop body
LE: loop exit
PB: predicated region body
PF: predicated region fallthrough
CT: control target
= control target key end

     0   :  { %18 = vsyncpa [#allocation3], 0  ;;  %s3618_s21 = smov [#allocation2]   ;;  %s4341_s0 = inlined_call_operand.vmem [shape: f32[2,8,64], index: 0, kind: input, shape index: {}]   ;;  %s4342_s1 = inlined_call_operand.vmem [shape: f32[2,8,64], index: 1, kind: input, shape index: {}]   ;;  %s4343_s2 = inlined_call_operand.vmem [shape: f32[32,16], index: 2, kind: input, shape index: {}]   ;;  %s4344_s3 = inlined_call_operand.vmem [shape: f32[32,9], index: 3, kind: input, shape index: {}]   ;;  %s4345_s4 = inlined_call_operand.vmem [shape: f32[48,32], index: 4, kind: input, shape index: {}]   ;;  %s4346_s5 = inlined_call_operand.vmem [shape: f32[32,48], index: 5, kind: input, shape index: {}]   ;;  %s4347_s6 = inlined_call_operand.vmem [shape: f32[48,32], index: 6, kind: input, shape index: {}]   ;;  %s4348_s7 = inlined_call_operand.vmem [shape: f32[32,10], index: 7, kind: input, shape index: {}]   ;;  %s4349_s8 = inlined_call_operand.vmem [shape: f32[48,4], index: 8, kind: input, shape index: {}]   ;;  %s4350_s9 = inlined_call_operand.hbm [shape: f32[9,128,128], index: 9, kind: input, shape index: {}]   ;;  %s4351_s10 = inlined_call_operand.vmem [shape: f32[128,128], index: 10, kind: input, shape index: {}]   ;;  %s4352_s11 = inlined_call_operand.vmem [shape: f32[12,128], index: 11, kind: output, shape index: {0}]   ;;  %s4353_s12 = inlined_call_operand.vmem [shape: f32[8,128], index: 12, kind: output, shape index: {1}]  }
   0x1   :  { %s42_s22 = sshll.u32 %s3618_s21, 4  ;;  %s3594_s25 = scalar_lea.hbm %s4350_s9, 18432  ;;  %s43_s22 = int_to_ptr.vmem [resolvable:$true] %s42_s22 }
   0x2   :  { %p3595_p0 = scmp.ne.s32.totalorder %s4350_s9, %s3594_s25  ;;  %p3598_p1 = scmp.lt.u32.totalorder %s3594_s25, %s4350_s9 }
   0x4   :  { %p3600_p2 = pnand %p3598_p1, %p3595_p0 }
   0x6   :  { %3603 = shalt.err (!%p3600_p2)
}
   0x7   :  { %s3604_s30 = scalar_lea.vmem %s43_s22, 18432  ;;  %p3609_p4 = scmp.lt.s32.totalorder %s43_s22, %s43_s22 }
   0x8   :  { %p3605_p3 = scmp.ne.s32.totalorder %s43_s22, %s3604_s30  ;;  %p3610_p5 = scmp.lt.s32.totalorder %s3604_s30, %s3604_s30 }
   0xa   :  { %p3611_p6 = por %p3610_p5, %p3609_p4 }
   0xc   :  { %p3612_p7 = pnand %p3611_p6, %p3605_p3 }
   0xe   :  { %3615 = shalt.err (!%p3612_p7)
}
   0xf   :  { %s3619_s13 = smov 128   ;;  %s3620_s14 = smov 8  }
  0x10   :  { %48 = dma.hbm_to_vmem [thread:$0]  %s4350_s9, 18432, %s43_s22, [#allocation3], %s3619_s13, %s3619_s13, %s3620_s14  }
  0x11   :  { %3616 = dma.done.wait [#allocation3], 18432  }
  0x12   :  { %3617 = vsyncadd [#allocation3], 4294948864  ;;  %vm99_vm0 = vcmask 130048   ;;  %v2390_v0 = vld [vmem:[%s4341_s0 + $0x8] sm:$0xff]  ;;  %v71_v3 = vld [vmem:[%s4343_s2] sm:$0xff]  ;;  %s3621_s24 = smov 64  }
  0x13   :  { %v2391_v1 = vld [vmem:[%s4342_s1 + $0x8] sm:$0xff]  ;;  %2660 = vmatprep.mubr.msk.f32.mxu0 %vm99_vm0, %v71_v3  ;;  %v3622_v5 = vmov 0   ;;  %v3729_v6 = vld [vmem:[%s4348_s7] sm:$0xff]  ;;  %v3735_v7 = vld [vmem:[%s4348_s7 + $0x10] sm:$0xff]  ;;  %vm64_vm1 = vcmask 523264   ;;  %v3623_v36 = vmov 2  }
  0x14   :  { %v3471_v2 = vpack.i.bf16 %v2391_v1, %v2390_v0  ;;  %v3722_v4 = vld [vmem:[%s4348_s7 + $0x8] sm:$0xff]  ;;  %3477 = vset.pattern.permute.xlu1 %v3622_v5  ;;  %3476 = vset.pattern.permute.xlu0 %v3622_v5  ;;  %v3742_v8 = vld [vmem:[%s4348_s7 + $0x18] sm:$0xff]  ;;  %v54_v10 = vld [vmem:[%s4341_s0] sm:$0xff]  ;;  %v3624_v37 = vmov 1   ;;  %vm1656_vm6 = vcmask 261120   ;;  %vm2051_vm11 = vcmask 392192  }
  0x15   :  { %86 = vperm.xlu1 %3477, %v3722_v4   ;;  %v57_v11 = vld [vmem:[%s4342_s1] sm:$0xff]  ;;  %v72_v17 = vld [vmem:[%s4343_s2 + $0x8] sm:$0xff]  ;;  %v73_v18 = vld [vmem:[%s4343_s2 + $0x10] sm:$0xff] }
  0x16   :  { %3472 = vrot.lane.b32.xlu0 %v3471_v2, %s3621_s24  ;;  %v74_v19 = vld [vmem:[%s4343_s2 + $0x18] sm:$0xff]  ;;  %v325_v38 = vld [vmem:[#allocation2] sm:$0xff]  ;;  %v326_v39 = vld [vmem:[#allocation2 + $0x8] sm:$0xff] }
  0x17   :  { %v459_v40 = vld [vmem:[#allocation2 + $0x80] sm:$0xff]  ;;  %v3105_v41 = vpack.c.bf16 %v326_v39, %v325_v38  ;;  %v460_v42 = vld [vmem:[#allocation2 + $0x88] sm:$0xff]  ;;  %v327_v43 = vld [vmem:[#allocation2 + $0x10] sm:$0xff] }
  0x18   :  { %v328_v44 = vld [vmem:[#allocation2 + $0x18] sm:$0xff]  ;;  %v3137_v45 = vpack.c.bf16 %v460_v42, %v459_v40  ;;  %v461_v47 = vld [vmem:[#allocation2 + $0x90] sm:$0xff]  ;;  %v329_v49 = vld [vmem:[#allocation2 + $0x20] sm:$0xff] }
  0x19   :  { %91 = vperm.xlu1 %3477, %v3735_v7   ;;  %v3109_v46 = vpack.c.bf16 %v328_v44, %v327_v43  ;;  %v462_v48 = vld [vmem:[#allocation2 + $0x98] sm:$0xff]  ;;  %3106 = vmatprep.subr.bf16.mxu1 %v3105_v41  ;;  %v330_v51 = vld [vmem:[#allocation2 + $0x28] sm:$0xff]  ;;  %v463_v52 = vld [vmem:[#allocation2 + $0xa0] sm:$0xff] }
  0x1a   :  { %81 = vperm.xlu0 %3476, %v3729_v6   ;;  %v3141_v50 = vpack.c.bf16 %v462_v48, %v461_v47  ;;  %v464_v53 = vld [vmem:[#allocation2 + $0xa8] sm:$0xff]  ;;  %3108 = vmatpush3.bf16.msra.mxu1 %v3105_v41  ;;  %v3113_v54 = vpack.c.bf16 %v330_v51, %v329_v49  ;;  %v331_v56 = vld [vmem:[#allocation2 + $0x30] sm:$0xff]  ;;  %v332_v57 = vld [vmem:[#allocation2 + $0x38] sm:$0xff] }
  0x1b   :  { %3110 = vmatprep.subr.bf16.mxu1 %v3109_v46  ;;  %v3145_v55 = vpack.c.bf16 %v464_v53, %v463_v52  ;;  %v465_v58 = vld [vmem:[#allocation2 + $0xb0] sm:$0xff]  ;;  %v466_v59 = vld [vmem:[#allocation2 + $0xb8] sm:$0xff]  ;;  %v3117_v60 = vpack.c.bf16 %v332_v57, %v331_v56  ;;  %v333_v62 = vld [vmem:[#allocation2 + $0x40] sm:$0xff] }
  0x1c   :  { %v3149_v61 = vpack.c.bf16 %v466_v59, %v465_v58  ;;  %v334_v63 = vld [vmem:[#allocation2 + $0x48] sm:$0xff]  ;;  %v467_v0 = vld [vmem:[#allocation2 + $0xc0] sm:$0xff] }
  0x1d   :  { %96 = vperm.xlu1 %3477, %v3742_v8   ;;  %v468_v1 = vld [vmem:[#allocation2 + $0xc8] sm:$0xff]  ;;  %v3121_v2 = vpack.c.bf16 %v334_v63, %v333_v62  ;;  %v471_v56 = vld [vmem:[#allocation2 + $0xe0] sm:$0xff]  ;;  %v3625_v63 = vmov 3  }
  0x1e   :  { %3478 = vset.pattern.permute.xlu0 %v3624_v37  ;;  %3112 = vmatpush3.bf16.msra.mxu1 %v3109_v46  ;;  %v3153_v3 = vpack.c.bf16 %v468_v1, %v467_v0  ;;  %v472_v59 = vld [vmem:[#allocation2 + $0xe8] sm:$0xff]  ;;  %v339_v0 = vld [vmem:[#allocation2 + $0x70] sm:$0xff]  ;;  %v340_v1 = vld [vmem:[#allocation2 + $0x78] sm:$0xff] }
  0x1f   :  { %3114 = vmatprep.subr.bf16.mxu1 %v3113_v54 }
  0x21   :  { %3479 = vset.pattern.permute.xlu1 %v3623_v36 }
  0x22   :  { %3116 = vmatpush3.bf16.msra.mxu1 %v3113_v54  ;;  %v337_v54 = vld [vmem:[#allocation2 + $0x60] sm:$0xff] }
  0x23   :  { %3118 = vmatprep.subr.bf16.mxu1 %v3117_v60 }
  0x26   :  { %3120 = vmatpush3.bf16.msra.mxu1 %v3117_v60 }
  0x27   :  { %3122 = vmatprep.subr.bf16.mxu1 %v3121_v2 }
  0x2a   :  { %3124 = vmatpush3.bf16.msra.mxu1 %v3121_v2  ;;  %v473_v2 = vld [vmem:[#allocation2 + $0xf0] sm:$0xff] }
  0x88   :  { %v3473_v9 = vpop.permute.xlu0 %3472 }
  0x89   :  { %v3475_v12 = vunpack.i.h.bf16 %v3473_v9  ;;  %v3474_v13 = vunpack.i.l.bf16 %v3473_v9  ;;  %v335_v9 = vld [vmem:[#allocation2 + $0x50] sm:$0xff] }
  0x8b   :  { %v65_v14 = vsel %vm64_vm1, %v54_v10, %v3474_v13  ;;  %v70_v15 = vsel %vm64_vm1, %v57_v11, %v3475_v12  ;;  %v336_v10 = vld [vmem:[#allocation2 + $0x58] sm:$0xff]  ;;  %v469_v11 = vld [vmem:[#allocation2 + $0xd0] sm:$0xff] }
  0x8c   :  { %v3101_v16 = vpack.c.bf16 %v70_v15, %v65_v14  ;;  %v470_v12 = vld [vmem:[#allocation2 + $0xd8] sm:$0xff]  ;;  %v3125_v13 = vpack.c.bf16 %v336_v10, %v335_v9 }
  0x8d   :  { %v3157_v14 = vpack.c.bf16 %v470_v12, %v469_v11  ;;  %v474_v9 = vld [vmem:[#allocation2 + $0xf8] sm:$0xff]  ;;  %v585_v11 = vld [vmem:[#allocation2 + $0x100] sm:$0xff]  ;;  %v586_v12 = vld [vmem:[#allocation2 + $0x108] sm:$0xff] }
  0x8e   :  { %3102 = vmatprep.subr.bf16.mxu0 %v3101_v16  ;;  %3126 = vmatprep.subr.bf16.mxu1 %v3125_v13  ;;  %v3165_v10 = vpack.c.bf16 %v474_v9, %v473_v2  ;;  %v594_v9 = vld [vmem:[#allocation2 + $0x148] sm:$0xff] }
  0x8f   :  { %3104 = vmatpush3.bf16.msra.mxu0 %v3101_v16  ;;  %3128 = vmatpush3.bf16.msra.mxu1 %v3125_v13  ;;  %v711_v13 = vld [vmem:[#allocation2 + $0x180] sm:$0xff] }
  0x90   :  { %3138 = vmatprep.subr.bf16.mxu0 %v3137_v45 }
  0x92   :  { %2661 = vmatmul.mubr.msk.f32.vlgmr.msra.gmra.mrb[0].mxu0 %vm99_vm0, %v72_v17 }
  0x93   :  { %2663 = vmatprep.mubr.msk.f32.mxu0 %vm99_vm0, %v73_v18  ;;  %3140 = vmatpush3.bf16.msra.mxu0 %v3137_v45 }
  0x94   :  { %v87_v20 = vpop.permute.xlu1 %86  ;;  %3142 = vmatprep.subr.bf16.mxu0 %v3141_v50 }
  0x96   :  { %2664 = vmatmul.mubr.msk.f32.gmra.mrb[2].mxu0 %vm99_vm0, %v74_v19  ;;  %vm2364_vm0 = vcmask 1043456  }
  0x97   :  { %3144 = vmatpush3.bf16.msra.mxu0 %v3141_v50 }
  0x98   :  { %v92_v26 = vpop.permute.xlu1 %91  ;;  %3146 = vmatprep.subr.bf16.mxu0 %v3145_v55 }
  0x99   :  { %v82_v21 = vpop.permute.xlu0 %81 }
  0x9b   :  { %3148 = vmatpush3.bf16.msra.mxu0 %v3145_v55  ;;  %v338_v55 = vld [vmem:[#allocation2 + $0x68] sm:$0xff] }
  0x9c   :  { %v97_v33 = vpop.permute.xlu1 %96  ;;  %3150 = vmatprep.subr.bf16.mxu0 %v3149_v61  ;;  %v3129_v58 = vpack.c.bf16 %v338_v55, %v337_v54  ;;  %v715_v54 = vld [vmem:[#allocation2 + $0x1a0] sm:$0xff]  ;;  %v716_v55 = vld [vmem:[#allocation2 + $0x1a8] sm:$0xff] }
  0x9e   :  { %3130 = vmatprep.subr.bf16.mxu1 %v3129_v58 }
  0x9f   :  { %3152 = vmatpush3.bf16.msra.mxu0 %v3149_v61  ;;  %v3161_v61 = vpack.c.bf16 %v472_v59, %v471_v56  ;;  %3132 = vmatpush3.bf16.msra.mxu1 %v3129_v58  ;;  %v3209_v58 = vpack.c.bf16 %v716_v55, %v715_v54  ;;  %v591_v59 = vld [vmem:[#allocation2 + $0x130] sm:$0xff] }
  0xa0   :  { %3154 = vmatprep.subr.bf16.mxu0 %v3153_v3 }
  0xa3   :  { %3156 = vmatpush3.bf16.msra.mxu0 %v3153_v3  ;;  %v3133_v3 = vpack.c.bf16 %v340_v1, %v339_v0 }
  0xa4   :  { %3158 = vmatprep.subr.bf16.mxu0 %v3157_v14 }
  0xa5   :  { %3134 = vmatprep.subr.bf16.mxu1 %v3133_v3 }
  0xa6   :  { %3136 = vmatpush3.bf16.msra.mxu1 %v3133_v3  ;;  %v593_v3 = vld [vmem:[#allocation2 + $0x140] sm:$0xff] }
  0xa7   :  { %3160 = vmatpush3.bf16.msra.mxu0 %v3157_v14  ;;  %v3811_v14 = vpack.c.bf16 %v586_v12, %v585_v11  ;;  %v720_v11 = vld [vmem:[#allocation2 + $0x1c8] sm:$0xff]  ;;  %v3627_v12 = vmov 5  }
  0xa8   :  { %3162 = vmatprep.subr.bf16.mxu0 %v3161_v61 }
  0xa9   :  { %3170 = vmatprep.subr.bf16.mxu1 %v3811_v14 }
  0xab   :  { %3164 = vmatpush3.bf16.msra.mxu0 %v3161_v61  ;;  %v717_v61 = vld [vmem:[#allocation2 + $0x1b0] sm:$0xff] }
  0xac   :  { %3166 = vmatprep.subr.bf16.mxu0 %v3165_v10 }
  0xaf   :  { %3168 = vmatpush3.bf16.msra.mxu0 %v3165_v10  ;;  %v719_v10 = vld [vmem:[#allocation2 + $0x1c0] sm:$0xff] }
 0x165   :  { %v2662_v22 = vpop.f32.mrb[0].mxu0 }
 0x166   :  { %v3763_v23 = vadd.f32 %v2662_v22, %v87_v20  ;;  %v178_v24 = vpop.f32.mrb[1].mxu0 }
 0x167   :  { %v3765_v25 = vadd.f32 %v178_v24, %v82_v21 }
 0x168   :  { %199 = vadd.xlane.f32.xlu1 %v3763_v23  ;;  %v210_v32 = vmul.f32 %v3763_v23, %v3763_v23 }
 0x169   :  { %v2665_v27 = vpop.f32.mrb[2].mxu0  ;;  %197 = vadd.xlane.f32.xlu0 %v3765_v25  ;;  %v209_v30 = vmul.f32 %v3765_v25, %v3765_v25 }
 0x16a   :  { %v188_v28 = vpop.f32.mrb[3].mxu0  ;;  %v3778_v34 = vadd.f32 %v2665_v27, %v97_v33 }
 0x16b   :  { %v3769_v29 = vadd.f32 %v188_v28, %v92_v26 }
 0x16c   :  { %v212_v35 = vmul.f32 %v3778_v34, %v3778_v34 }
 0x16d   :  { %201 = vadd.xlane.f32.xlu1 %v3769_v29  ;;  %213 = vadd.xlane.f32.xlu0 %v209_v30  ;;  %v211_v31 = vmul.f32 %v3769_v29, %v3769_v29 }
 0x171   :  { %215 = vadd.xlane.f32.xlu0 %v210_v32  ;;  %217 = vadd.xlane.f32.xlu1 %v211_v31 }
 0x175   :  { %203 = vadd.xlane.f32.xlu0 %v3778_v34 }
 0x179   :  { %219 = vadd.xlane.f32.xlu0 %v212_v35 }
 0x182   :  { %278 = vperm.xlu1 %3479, %v3729_v6  }
 0x186   :  { %282 = vperm.xlu1 %3479, %v3722_v4  }
 0x18a   :  { %3480 = vset.pattern.permute.xlu1 %v3624_v37 }
 0x1f5   :  { %v200_v17 = vpop.xlane.xlu1 %199 }
 0x1f6   :  { %v198_v15 = vpop.xlane.xlu0 %197  ;;  %v3790_v19 = vmul.f32 0.0078125, %v200_v17 }
 0x1f7   :  { %v3788_v16 = vmul.f32 0.0078125, %v198_v15  ;;  %v712_v15 = vld [vmem:[#allocation2 + $0x188] sm:$0xff] }
 0x1f8   :  { %v226_v26 = vmul.f32 %v3790_v19, %v3790_v19  ;;  %v3813_v17 = vpack.c.bf16 %v712_v15, %v711_v13  ;;  %v3185_v15 = vpack.c.bf16 %v594_v9, %v593_v3  ;;  %v841_v9 = vld [vmem:[#allocation2 + $0x220] sm:$0xff] }
 0x1f9   :  { %v225_v20 = vmul.f32 %v3788_v16, %v3788_v16 }
 0x1fa   :  { %v214_v18 = vpop.xlane.xlu0 %213  ;;  %v202_v27 = vpop.xlane.xlu1 %201  ;;  %3202 = vmatprep.subr.bf16.mxu0 %v3813_v17 }
 0x1fb   :  { %v221_v21 = vmul.f32 0.0078125, %v214_v18  ;;  %v3798_v41 = vmul.f32 0.0078125, %v202_v27 }
 0x1fd   :  { %v229_v22 = vsub.f32 %v221_v21, %v225_v20  ;;  %v227_v45 = vmul.f32 %v3798_v41, %v3798_v41  ;;  %v239_v13 = vsub.f32 %v3769_v29, %v3798_v41  ;;  %v597_v41 = vld [vmem:[#allocation2 + $0x160] sm:$0xff] }
 0x1fe   :  { %v216_v24 = vpop.xlane.xlu0 %215  ;;  %v218_v40 = vpop.xlane.xlu1 %217 }
 0x1ff   :  { %v233_v28 = vmax.f32 %v229_v22, 0.0  ;;  %v222_v30 = vmul.f32 0.0078125, %v216_v24  ;;  %v223_v46 = vmul.f32 0.0078125, %v218_v40  ;;  %v3831_v22 = vld [vmem:[%s4344_s3] sm:$0xff]  ;;  %v3849_v24 = vld [vmem:[%s4344_s3 + $0x10] sm:$0xff] }
 0x201   :  { %v241_v31 = vadd.f32 1e-05, %v233_v28  ;;  %v230_v32 = vsub.f32 %v222_v30, %v226_v26  ;;  %v231_v48 = vsub.f32 %v223_v46, %v227_v45  ;;  %v3857_v26 = vld [vmem:[%s4344_s3 + $0x18] sm:$0xff]  ;;  %v3626_v30 = vmov 4   ;;  %v587_v46 = vld [vmem:[#allocation2 + $0x110] sm:$0xff] }
 0x202   :  { %v204_v33 = vpop.xlane.xlu0 %203  ;;  %v279_v27 = vpop.permute.xlu1 %278 }
 0x203   :  { %3536 = vrsqrt.f32 %v241_v31  ;;  %v234_v35 = vmax.f32 %v230_v32, 0.0  ;;  %v3796_v38 = vmul.f32 0.0078125, %v204_v33  ;;  %v235_v52 = vmax.f32 %v231_v48, 0.0  ;;  %v714_v48 = vld [vmem:[#allocation2 + $0x198] sm:$0xff] }
 0x204   :  { %v237_v31 = vsub.f32 %v3765_v25, %v3788_v16  ;;  %v588_v16 = vld [vmem:[#allocation2 + $0x118] sm:$0xff] }
 0x205   :  { %v242_v39 = vadd.f32 1e-05, %v234_v35  ;;  %v228_v43 = vmul.f32 %v3796_v38, %v3796_v38  ;;  %v243_v62 = vadd.f32 1e-05, %v235_v52  ;;  %v240_v29 = vsub.f32 %v3778_v34, %v3796_v38 }
 0x206   :  { %v220_v42 = vpop.xlane.xlu0 %219  ;;  %v283_v28 = vpop.permute.xlu1 %282 }
 0x207   :  { %3538 = vrsqrt.f32 %v242_v39  ;;  %v224_v44 = vmul.f32 0.0078125, %v220_v42  ;;  %v238_v39 = vsub.f32 %v3763_v23, %v3790_v19 }
 0x209   :  { %v232_v47 = vsub.f32 %v224_v44, %v228_v43 }
 0x20b   :  { %v236_v49 = vmax.f32 %v232_v47, 0.0  ;;  %v713_v47 = vld [vmem:[#allocation2 + $0x190] sm:$0xff] }
 0x20d   :  { %v3537_v50 = vpop.eup %3536  ;;  %v244_v53 = vadd.f32 1e-05, %v236_v49  ;;  %v3173_v49 = vpack.c.bf16 %v588_v16, %v587_v46  ;;  %v599_v16 = vld [vmem:[#allocation2 + $0x170] sm:$0xff] }
 0x20e   :  { %v249_v51 = vmul.f32 %v3537_v50, %v3729_v6  ;;  %v3205_v50 = vpack.c.bf16 %v714_v48, %v713_v47  ;;  %v600_v48 = vld [vmem:[#allocation2 + $0x178] sm:$0xff] }
 0x20f   :  { %3540 = vrsqrt.f32 %v244_v53  ;;  %v590_v53 = vld [vmem:[#allocation2 + $0x128] sm:$0xff]  ;;  %v3197_v54 = vpack.c.bf16 %v600_v48, %v599_v16 }
 0x210   :  { %255 = vperm.xlu1 %3480, %v249_v51   ;;  %3542 = vrsqrt.f32 %v243_v62  ;;  %v589_v51 = vld [vmem:[#allocation2 + $0x120] sm:$0xff]  ;;  %v718_v62 = vld [vmem:[#allocation2 + $0x1b8] sm:$0xff]  ;;  %v850_v16 = vld [vmem:[#allocation2 + $0x268] sm:$0xff] }
 0x211   :  { %v3539_v57 = vpop.eup %3538  ;;  %v3213_v2 = vpack.c.bf16 %v718_v62, %v717_v61  ;;  %v839_v61 = vld [vmem:[#allocation2 + $0x210] sm:$0xff]  ;;  %v840_v62 = vld [vmem:[#allocation2 + $0x218] sm:$0xff]  ;;  %v976_v48 = vld [vmem:[#allocation2 + $0x2e8] sm:$0xff] }
 0x212   :  { %v250_v60 = vmul.f32 %v3539_v57, %v3722_v4  ;;  %v3177_v57 = vpack.c.bf16 %v590_v53, %v589_v51  ;;  %v837_v51 = vld [vmem:[#allocation2 + $0x200] sm:$0xff] }
 0x214   :  { %3481 = vset.pattern.permute.xlu1 %v3625_v63  ;;  %260 = vperm.xlu0 %3478, %v250_v60   ;;  %v592_v60 = vld [vmem:[#allocation2 + $0x138] sm:$0xff] }
 0x215   :  { %302 = vperm.xlu1 %3481, %v3729_v6   ;;  %v3181_v1 = vpack.c.bf16 %v592_v60, %v591_v59 }
 0x218   :  { %3485 = vset.pattern.permute.xlu0 %v3625_v63 }
 0x219   :  { %306 = vperm.xlu1 %3481, %v3722_v4   ;;  %310 = vperm.xlu0 %3485, %v3735_v7   ;;  %v3541_v18 = vpop.eup %3540 }
 0x21a   :  { %v252_v4 = vmul.f32 %v3541_v18, %v3742_v8  ;;  %v3543_v20 = vpop.eup %3542 }
 0x21b   :  { %v251_v21 = vmul.f32 %v3543_v20, %v3735_v7 }
 0x21d   :  { %3482 = vset.pattern.permute.xlu1 %v3623_v36  ;;  %3488 = vset.pattern.permute.xlu0 %v3622_v5 }
 0x21e   :  { %286 = vperm.xlu1 %3482, %v3735_v7   ;;  %v3839_v7 = vld [vmem:[%s4344_s3 + $0x8] sm:$0xff] }
 0x21f   :  { %437 = vperm.xlu0 %3488, %v3839_v7  }
 0x222   :  { %3483 = vset.pattern.permute.xlu1 %v3624_v37 }
 0x223   :  { %270 = vperm.xlu1 %3483, %v252_v4   ;;  %447 = vperm.xlu0 %3488, %v3857_v26   ;;  %v595_v4 = vld [vmem:[#allocation2 + $0x150] sm:$0xff] }
 0x227   :  { %265 = vperm.xlu1 %3483, %v251_v21   ;;  %3492 = vset.pattern.permute.xlu0 %v3623_v36  ;;  %v596_v21 = vld [vmem:[#allocation2 + $0x158] sm:$0xff] }
 0x228   :  { %687 = vperm.xlu0 %3492, %v3831_v22  }
 0x22b   :  { %3484 = vset.pattern.permute.xlu1 %v3623_v36 }
 0x22c   :  { %290 = vperm.xlu1 %3484, %v3742_v8   ;;  %699 = vperm.xlu0 %3492, %v3857_v26  }
 0x230   :  { %3486 = vset.pattern.permute.xlu1 %v3625_v63  ;;  %3496 = vset.pattern.permute.xlu0 %v3625_v63 }
 0x231   :  { %314 = vperm.xlu1 %3486, %v3742_v8   ;;  %813 = vperm.xlu0 %3496, %v3831_v22  }
 0x235   :  { %3487 = vset.pattern.permute.xlu1 %v3622_v5  ;;  %821 = vperm.xlu0 %3496, %v3849_v24  }
 0x236   :  { %432 = vperm.xlu1 %3487, %v3831_v22  }
 0x239   :  { %3500 = vset.pattern.permute.xlu0 %v3627_v12 }
 0x23a   :  { %3489 = vset.pattern.permute.xlu1 %v3624_v37  ;;  %1069 = vperm.xlu0 %3500, %v3839_v7  }
 0x23b   :  { %561 = vperm.xlu1 %3489, %v3831_v22  }
 0x23e   :  { %1077 = vperm.xlu0 %3500, %v3857_v26  }
 0x23f   :  { %565 = vperm.xlu1 %3489, %v3839_v7  }
 0x243   :  { %3490 = vset.pattern.permute.xlu1 %v3623_v36 }
 0x244   :  { %691 = vperm.xlu1 %3490, %v3839_v7  }
 0x248   :  { %3491 = vset.pattern.permute.xlu1 %v3622_v5 }
 0x249   :  { %442 = vperm.xlu1 %3491, %v3849_v24  }
 0x24d   :  { %3493 = vset.pattern.permute.xlu1 %v3624_v37 }
 0x24e   :  { %569 = vperm.xlu1 %3493, %v3849_v24  }
 0x252   :  { %573 = vperm.xlu1 %3493, %v3857_v26  }
 0x256   :  { %3494 = vset.pattern.permute.xlu1 %v3625_v63 }
 0x257   :  { %817 = vperm.xlu1 %3494, %v3839_v7  }
 0x25b   :  { %3495 = vset.pattern.permute.xlu1 %v3623_v36 }
 0x25c   :  { %695 = vperm.xlu1 %3495, %v3849_v24  }
 0x260   :  { %3497 = vset.pattern.permute.xlu1 %v3626_v30 }
 0x261   :  { %939 = vperm.xlu1 %3497, %v3831_v22  }
 0x265   :  { %943 = vperm.xlu1 %3497, %v3839_v7  }
 0x269   :  { %3498 = vset.pattern.permute.xlu1 %v3625_v63 }
 0x26a   :  { %825 = vperm.xlu1 %3498, %v3857_v26  }
 0x26e   :  { %3499 = vset.pattern.permute.xlu1 %v3627_v12 }
 0x26f   :  { %1065 = vperm.xlu1 %3499, %v3831_v22  }
 0x273   :  { %3501 = vset.pattern.permute.xlu1 %v3626_v30 }
 0x274   :  { %947 = vperm.xlu1 %3501, %v3849_v24  }
 0x278   :  { %951 = vperm.xlu1 %3501, %v3857_v26  }
 0x28f   :  { %v256_v32 = vpop.permute.xlu1 %255 }
 0x290   :  { %v273_v33 = vmul.f32 %v256_v32, %v237_v31 }
 0x292   :  { %v293_v35 = vadd.f32 %v279_v27, %v273_v33  ;;  %v721_v27 = vld [vmem:[#allocation2 + $0x1d0] sm:$0xff] }
 0x293   :  { %v261_v40 = vpop.permute.xlu0 %260 }
 0x294   :  { %v274_v42 = vmul.f32 %v261_v40, %v238_v39  ;;  %v303_v43 = vpop.permute.xlu1 %302  ;;  %vm297_vm2 = vcmp.ge.f32.partialorder %v293_v35, 0.0  ;;  %v598_v40 = vld [vmem:[#allocation2 + $0x168] sm:$0xff] }
 0x295   :  { %v317_v44 = vmul.f32 %v303_v43, %v293_v35  ;;  %v724_v43 = vld [vmem:[#allocation2 + $0x1e8] sm:$0xff]  ;;  %v3193_v38 = vpack.c.bf16 %v598_v40, %v597_v41  ;;  %v848_v40 = vld [vmem:[#allocation2 + $0x258] sm:$0xff] }
 0x296   :  { %v294_v45 = vadd.f32 %v283_v28, %v274_v42  ;;  %v722_v28 = vld [vmem:[#allocation2 + $0x1d8] sm:$0xff]  ;;  %v723_v42 = vld [vmem:[#allocation2 + $0x1e0] sm:$0xff]  ;;  %v972_v41 = vld [vmem:[#allocation2 + $0x2c8] sm:$0xff] }
 0x297   :  { %v3879_v25 = vsel %vm297_vm2, %v293_v35, %v317_v44  ;;  %v3189_v35 = vpack.c.bf16 %v596_v21, %v595_v4  ;;  %v3221_v39 = vpack.c.bf16 %v722_v28, %v721_v27  ;;  %v3225_v46 = vpack.c.bf16 %v724_v43, %v723_v42  ;;  %v969_v4 = vld [vmem:[#allocation2 + $0x2b0] sm:$0xff]  ;;  %v845_v28 = vld [vmem:[#allocation2 + $0x240] sm:$0xff]  ;;  %v974_v43 = vld [vmem:[#allocation2 + $0x2d8] sm:$0xff] }
 0x298   :  { %2698 = vmatprep.mubr.f32.mxu1 %v3879_v25  ;;  %2736 = vmatprep.mubr.f32.mxu0 %v3879_v25  ;;  %v307_v23 = vpop.permute.xlu1 %306  ;;  %vm298_vm3 = vcmp.ge.f32.partialorder %v294_v45, 0.0  ;;  %v311_v20 = vpop.permute.xlu0 %310  ;;  %v973_v42 = vld [vmem:[#allocation2 + $0x2d0] sm:$0xff] }
 0x299   :  { %v318_v19 = vmul.f32 %v307_v23, %v294_v45  ;;  %v725_v23 = vld [vmem:[#allocation2 + $0x1f0] sm:$0xff] }
 0x29b   :  { %v3884_v52 = vsel %vm298_vm3, %v294_v45, %v318_v19  ;;  %v726_v19 = vld [vmem:[#allocation2 + $0x1f8] sm:$0xff] }
 0x29c   :  { %2699 = vmatmul.mubr.f32.vlgmr.msra.gmra.mrb[0].mxu1 %v3884_v52  ;;  %2737 = vmatmul.mubr.f32.vlgmr.msra.gmra.mrb[4].mxu0 %v3884_v52  ;;  %v3229_v55 = vpack.c.bf16 %v726_v19, %v725_v23 }
 0x29d   :  { %3172 = vmatpush3.bf16.msra.mxu1 %v3811_v14  ;;  %3204 = vmatpush3.bf16.msra.mxu0 %v3813_v17  ;;  %v287_v56 = vpop.permute.xlu1 %286  ;;  %v3217_v17 = vpack.c.bf16 %v720_v11, %v719_v10  ;;  %v842_v10 = vld [vmem:[#allocation2 + $0x228] sm:$0xff]  ;;  %v967_v11 = vld [vmem:[#allocation2 + $0x2a0] sm:$0xff] }
 0x29e   :  { %3174 = vmatprep.subr.bf16.mxu1 %v3173_v49  ;;  %3206 = vmatprep.subr.bf16.mxu0 %v3205_v50 }
 0x2a1   :  { %3176 = vmatpush3.bf16.msra.mxu1 %v3173_v49  ;;  %3208 = vmatpush3.bf16.msra.mxu0 %v3205_v50  ;;  %v3628_v49 = vmov 6  }
 0x2a2   :  { %v271_v0 = vpop.permute.xlu1 %270  ;;  %3178 = vmatprep.subr.bf16.mxu1 %v3177_v57  ;;  %3210 = vmatprep.subr.bf16.mxu0 %v3209_v58 }
 0x2a3   :  { %v276_v44 = vmul.f32 %v271_v0, %v240_v29  ;;  %3504 = vset.pattern.permute.xlu0 %v3628_v49  ;;  %v965_v0 = vld [vmem:[#allocation2 + $0x290] sm:$0xff]  ;;  %3502 = vset.pattern.permute.xlu1 %v3628_v49  ;;  %v971_v29 = vld [vmem:[#allocation2 + $0x2c0] sm:$0xff] }
 0x2a4   :  { %1191 = vperm.xlu0 %3504, %v3831_v22   ;;  %1195 = vperm.xlu1 %3502, %v3839_v7  }
 0x2a5   :  { %3180 = vmatpush3.bf16.msra.mxu1 %v3177_v57  ;;  %3212 = vmatpush3.bf16.msra.mxu0 %v3209_v58  ;;  %v963_v57 = vld [vmem:[#allocation2 + $0x280] sm:$0xff]  ;;  %v964_v58 = vld [vmem:[#allocation2 + $0x288] sm:$0xff] }
 0x2a6   :  { %v266_v14 = vpop.permute.xlu1 %265  ;;  %3182 = vmatprep.subr.bf16.mxu1 %v3181_v1  ;;  %3214 = vmatprep.subr.bf16.mxu0 %v3213_v2  ;;  %v3265_v60 = vpack.c.bf16 %v964_v58, %v963_v57  ;;  %v1089_v58 = vld [vmem:[#allocation2 + $0x300] sm:$0xff] }
 0x2a7   :  { %v275_v18 = vmul.f32 %v266_v14, %v239_v13  ;;  %v968_v13 = vld [vmem:[#allocation2 + $0x2a8] sm:$0xff]  ;;  %v3241_v14 = vpack.c.bf16 %v842_v10, %v841_v9  ;;  %v1093_v9 = vld [vmem:[#allocation2 + $0x320] sm:$0xff] }
 0x2a8   :  { %1199 = vperm.xlu0 %3504, %v3849_v24   ;;  %3503 = vset.pattern.permute.xlu1 %v3627_v12  ;;  %v1094_v10 = vld [vmem:[#allocation2 + $0x328] sm:$0xff] }
 0x2a9   :  { %v295_v31 = vadd.f32 %v287_v56, %v275_v18  ;;  %3184 = vmatpush3.bf16.msra.mxu1 %v3181_v1  ;;  %3216 = vmatpush3.bf16.msra.mxu0 %v3213_v2  ;;  %v838_v56 = vld [vmem:[#allocation2 + $0x208] sm:$0xff]  ;;  %v966_v1 = vld [vmem:[#allocation2 + $0x298] sm:$0xff]  ;;  %v3237_v2 = vpack.c.bf16 %v840_v62, %v839_v61  ;;  %v1091_v62 = vld [vmem:[#allocation2 + $0x310] sm:$0xff] }
 0x2aa   :  { %3186 = vmatprep.subr.bf16.mxu1 %v3185_v15  ;;  %3218 = vmatprep.subr.bf16.mxu0 %v3217_v17  ;;  %v3233_v59 = vpack.c.bf16 %v838_v56, %v837_v51  ;;  %v3269_v3 = vpack.c.bf16 %v966_v1, %v965_v0  ;;  %v844_v18 = vld [vmem:[#allocation2 + $0x238] sm:$0xff]  ;;  %v1216_v61 = vld [vmem:[#allocation2 + $0x388] sm:$0xff]  ;;  %v1217_v1 = vld [vmem:[#allocation2 + $0x390] sm:$0xff] }
 0x2ab   :  { %vm299_vm4 = vcmp.ge.f32.partialorder %v295_v31, 0.0  ;;  %v319_v32 = vmul.f32 %v311_v20, %v295_v31  ;;  %v291_v33 = vpop.permute.xlu1 %290  ;;  %v970_v20 = vld [vmem:[#allocation2 + $0x2b8] sm:$0xff]  ;;  %1073 = vperm.xlu1 %3503, %v3849_v24  }
 0x2ac   :  { %v296_v34 = vadd.f32 %v291_v33, %v276_v44  ;;  %v3277_v27 = vpack.c.bf16 %v970_v20, %v969_v4  ;;  %v3630_v44 = vmov 7   ;;  %v852_v51 = vld [vmem:[#allocation2 + $0x278] sm:$0xff] }
 0x2ad   :  { %v3901_v45 = vsel %vm299_vm4, %v295_v31, %v319_v32  ;;  %3188 = vmatpush3.bf16.msra.mxu1 %v3185_v15  ;;  %3220 = vmatpush3.bf16.msra.mxu0 %v3217_v17  ;;  %v3273_v15 = vpack.c.bf16 %v968_v13, %v967_v11  ;;  %v843_v17 = vld [vmem:[#allocation2 + $0x230] sm:$0xff]  ;;  %v846_v31 = vld [vmem:[#allocation2 + $0x248] sm:$0xff]  ;;  %v3629_v32 = vmov 8   ;;  %v1092_v0 = vld [vmem:[#allocation2 + $0x318] sm:$0xff] }
 0x2ae   :  { %2701 = vmatprep.mubr.f32.mxu1 %v3901_v45  ;;  %2739 = vmatprep.mubr.f32.mxu0 %v3901_v45  ;;  %vm300_vm5 = vcmp.ge.f32.partialorder %v296_v34, 0.0  ;;  %v3245_v21 = vpack.c.bf16 %v844_v18, %v843_v17  ;;  %v3249_v33 = vpack.c.bf16 %v846_v31, %v845_v28  ;;  %v1219_v11 = vld [vmem:[#allocation2 + $0x3a0] sm:$0xff]  ;;  %v1220_v13 = vld [vmem:[#allocation2 + $0x3a8] sm:$0xff]  ;;  %v1095_v17 = vld [vmem:[#allocation2 + $0x330] sm:$0xff] }
 0x2af   :  { %3190 = vmatprep.subr.bf16.mxu1 %v3189_v35  ;;  %3222 = vmatprep.subr.bf16.mxu0 %v3221_v39  ;;  %v1221_v18 = vld [vmem:[#allocation2 + $0x3b0] sm:$0xff]  ;;  %v1222_v4 = vld [vmem:[#allocation2 + $0x3b8] sm:$0xff]  ;;  %v1098_v28 = vld [vmem:[#allocation2 + $0x348] sm:$0xff] }
 0x2b0   :  { %v315_v47 = vpop.permute.xlu1 %314  ;;  %3508 = vset.pattern.permute.xlu0 %v3629_v32  ;;  %3505 = vset.pattern.permute.xlu1 %v3630_v44  ;;  %v1223_v31 = vld [vmem:[#allocation2 + $0x3c0] sm:$0xff] }
 0x2b1   :  { %v320_v50 = vmul.f32 %v315_v47, %v296_v34  ;;  %3192 = vmatpush3.bf16.msra.mxu1 %v3189_v35  ;;  %3224 = vmatpush3.bf16.msra.mxu0 %v3221_v39  ;;  %v3281_v35 = vpack.c.bf16 %v972_v41, %v971_v29  ;;  %v847_v39 = vld [vmem:[#allocation2 + $0x250] sm:$0xff]  ;;  %v975_v47 = vld [vmem:[#allocation2 + $0x2e0] sm:$0xff]  ;;  %v1224_v29 = vld [vmem:[#allocation2 + $0x3c8] sm:$0xff] }
 0x2b2   :  { %3194 = vmatprep.subr.bf16.mxu1 %v3193_v38  ;;  %3226 = vmatprep.subr.bf16.mxu0 %v3225_v46  ;;  %v3289_v19 = vpack.c.bf16 %v976_v48, %v975_v47 }
 0x2b3   :  { %v3907_v53 = vsel %vm300_vm5, %v296_v34, %v320_v50  ;;  %1447 = vperm.xlu0 %3508, %v3839_v7   ;;  %v3253_v34 = vpack.c.bf16 %v848_v40, %v847_v39  ;;  %1317 = vperm.xlu1 %3505, %v3831_v22   ;;  %v851_v50 = vld [vmem:[#allocation2 + $0x270] sm:$0xff]  ;;  %v1100_v39 = vld [vmem:[#allocation2 + $0x358] sm:$0xff] }
 0x2b4   :  { %2702 = vmatmul.mubr.f32.gmra.mrb[2].mxu1 %v3907_v53  ;;  %2740 = vmatmul.mubr.f32.gmra.mrb[6].mxu0 %v3907_v53  ;;  %v3261_v56 = vpack.c.bf16 %v852_v51, %v851_v50  ;;  %v1225_v40 = vld [vmem:[#allocation2 + $0x3d0] sm:$0xff]  ;;  %v1230_v51 = vld [vmem:[#allocation2 + $0x3f8] sm:$0xff] }
 0x2b5   :  { %3196 = vmatpush3.bf16.msra.mxu1 %v3193_v38  ;;  %3228 = vmatpush3.bf16.msra.mxu0 %v3225_v46  ;;  %v3285_v38 = vpack.c.bf16 %v974_v43, %v973_v42  ;;  %v849_v46 = vld [vmem:[#allocation2 + $0x260] sm:$0xff]  ;;  %v1226_v42 = vld [vmem:[#allocation2 + $0x3d8] sm:$0xff]  ;;  %v1229_v50 = vld [vmem:[#allocation2 + $0x3f0] sm:$0xff] }
 0x2b6   :  { %2774 = vmatprep.mubr.f32.mxu1 %v3879_v25  ;;  %2812 = vmatprep.mubr.f32.mxu0 %v3879_v25  ;;  %v3257_v23 = vpack.c.bf16 %v850_v16, %v849_v46  ;;  %v1227_v46 = vld [vmem:[#allocation2 + $0x3e0] sm:$0xff]  ;;  %v1228_v16 = vld [vmem:[#allocation2 + $0x3e8] sm:$0xff] }
 0x2b7   :  { %3198 = vmatprep.subr.bf16.mxu1 %v3197_v54  ;;  %3230 = vmatprep.subr.bf16.mxu0 %v3229_v55  ;;  %v3353_v48 = vpack.c.bf16 %v1228_v16, %v1227_v46 }
 0x2b8   :  { %1451 = vperm.xlu0 %3508, %v3849_v24   ;;  %1321 = vperm.xlu1 %3505, %v3839_v7  }
 0x2b9   :  { %3200 = vmatpush3.bf16.msra.mxu1 %v3197_v54  ;;  %3232 = vmatpush3.bf16.msra.mxu0 %v3229_v55  ;;  %v977_v54 = vld [vmem:[#allocation2 + $0x2f0] sm:$0xff]  ;;  %v978_v55 = vld [vmem:[#allocation2 + $0x2f8] sm:$0xff] }
 0x2ba   :  { %3234 = vmatprep.subr.bf16.mxu1 %v3233_v59  ;;  %3266 = vmatprep.subr.bf16.mxu0 %v3265_v60  ;;  %v3293_v57 = vpack.c.bf16 %v978_v55, %v977_v54  ;;  %v3357_v55 = vpack.c.bf16 %v1230_v51, %v1229_v50 }
 0x2bc   :  { %2775 = vmatmul.mubr.f32.vlgmr.msra.gmra.mrb[4].mxu1 %v3884_v52  ;;  %2813 = vmatmul.mubr.f32.vlgmr.msra.gmra.mrb[8].mxu0 %v3884_v52 }
 0x2bd   :  { %2777 = vmatprep.mubr.f32.mxu1 %v3901_v45  ;;  %2815 = vmatprep.mubr.f32.mxu0 %v3901_v45 }
 0x2be   :  { %3236 = vmatpush3.bf16.msra.mxu1 %v3233_v59  ;;  %3268 = vmatpush3.bf16.msra.mxu0 %v3265_v60  ;;  %v1090_v59 = vld [vmem:[#allocation2 + $0x308] sm:$0xff]  ;;  %v1215_v60 = vld [vmem:[#allocation2 + $0x380] sm:$0xff] }
 0x2bf   :  { %3238 = vmatprep.subr.bf16.mxu1 %v3237_v2  ;;  %3270 = vmatprep.subr.bf16.mxu0 %v3269_v3  ;;  %v3329_v7 = vpack.c.bf16 %v1216_v61, %v1215_v60  ;;  %v1344_v60 = vld [vmem:[#allocation2 + $0x418] sm:$0xff]  ;;  %v3964_v61 = vld [vmem:[%s4348_s7 + $0x10] sm:$0xff] }
 0x2c0   :  { %2778 = vmatmul.mubr.f32.gmra.mrb[6].mxu1 %v3907_v53  ;;  %2816 = vmatmul.mubr.f32.gmra.mrb[10].mxu0 %v3907_v53 }
 0x2c1   :  { %2850 = vmatprep.mubr.f32.mxu1 %v3879_v25  ;;  %2888 = vmatprep.mubr.f32.mxu0 %v3879_v25 }
 0x2c2   :  { %3240 = vmatpush3.bf16.msra.mxu1 %v3237_v2  ;;  %3272 = vmatpush3.bf16.msra.mxu0 %v3269_v3  ;;  %v1218_v2 = vld [vmem:[#allocation2 + $0x398] sm:$0xff] }
 0x2c3   :  { %3242 = vmatprep.subr.bf16.mxu1 %v3241_v14  ;;  %3274 = vmatprep.subr.bf16.mxu0 %v3273_v15  ;;  %v3333_v3 = vpack.c.bf16 %v1218_v2, %v1217_v1  ;;  %v1348_v1 = vld [vmem:[#allocation2 + $0x438] sm:$0xff] }
 0x2c4   :  { %3511 = vset.pattern.permute.xlu0 %v3626_v30  ;;  %3506 = vset.pattern.permute.xlu1 %v3628_v49 }
 0x2c5   :  { %1467 = vperm.xlu0 %3511, %v3729_v6   ;;  %1203 = vperm.xlu1 %3506, %v3857_v26   ;;  %v3297_v6 = vpack.c.bf16 %v1090_v59, %v1089_v58  ;;  %v3958_v58 = vld [vmem:[%s4348_s7 + $0x8] sm:$0xff]  ;;  %v1343_v59 = vld [vmem:[#allocation2 + $0x410] sm:$0xff] }
 0x2c6   :  { %3244 = vmatpush3.bf16.msra.mxu1 %v3241_v14  ;;  %3276 = vmatpush3.bf16.msra.mxu0 %v3273_v15  ;;  %v3305_v14 = vpack.c.bf16 %v1094_v10, %v1093_v9  ;;  %v3337_v15 = vpack.c.bf16 %v1220_v13, %v1219_v11  ;;  %v1351_v10 = vld [vmem:[#allocation2 + $0x450] sm:$0xff]  ;;  %v1352_v11 = vld [vmem:[#allocation2 + $0x458] sm:$0xff] }
 0x2c7   :  { %3246 = vmatprep.subr.bf16.mxu1 %v3245_v21  ;;  %3278 = vmatprep.subr.bf16.mxu0 %v3277_v27  ;;  %v3381_v13 = vpack.c.bf16 %v1352_v11, %v1351_v10 }
 0x2c9   :  { %1479 = vperm.xlu0 %3511, %v3742_v8   ;;  %3507 = vset.pattern.permute.xlu1 %v3629_v32  ;;  %v3301_v8 = vpack.c.bf16 %v1092_v0, %v1091_v62  ;;  %v1347_v0 = vld [vmem:[#allocation2 + $0x430] sm:$0xff] }
 0x2ca   :  { %3248 = vmatpush3.bf16.msra.mxu1 %v3245_v21  ;;  %3280 = vmatpush3.bf16.msra.mxu0 %v3277_v27  ;;  %v3341_v21 = vpack.c.bf16 %v1222_v4, %v1221_v18  ;;  %v1097_v27 = vld [vmem:[#allocation2 + $0x340] sm:$0xff]  ;;  %v3373_v2 = vpack.c.bf16 %v1348_v1, %v1347_v0  ;;  %v433_v4 = vpop.permute.xlu1 %432 }
 0x2cb   :  { %3250 = vmatprep.subr.bf16.mxu1 %v3249_v33  ;;  %3282 = vmatprep.subr.bf16.mxu0 %v3281_v35  ;;  %v3313_v41 = vpack.c.bf16 %v1098_v28, %v1097_v27 }
 0x2cc   :  { %1443 = vperm.xlu1 %3507, %v3831_v22   ;;  %v1096_v22 = vld [vmem:[#allocation2 + $0x338] sm:$0xff] }
 0x2cd   :  { %3515 = vset.pattern.permute.xlu0 %v3628_v49  ;;  %v3309_v20 = vpack.c.bf16 %v1096_v22, %v1095_v17  ;;  %v1355_v22 = vld [vmem:[#allocation2 + $0x470] sm:$0xff] }
 0x2ce   :  { %3252 = vmatpush3.bf16.msra.mxu1 %v3249_v33  ;;  %3284 = vmatpush3.bf16.msra.mxu0 %v3281_v35  ;;  %v3345_v33 = vpack.c.bf16 %v1224_v29, %v1223_v31  ;;  %v1099_v35 = vld [vmem:[#allocation2 + $0x350] sm:$0xff]  ;;  %v438_v31 = vpop.permute.xlu0 %437 }
 0x2cf   :  { %3254 = vmatprep.subr.bf16.mxu1 %v3253_v34  ;;  %3286 = vmatprep.subr.bf16.mxu0 %v3285_v38  ;;  %v3317_v43 = vpack.c.bf16 %v1100_v39, %v1099_v35 }
 0x2d0   :  { %3509 = vset.pattern.permute.xlu1 %v3630_v44 }
 0x2d1   :  { %1325 = vperm.xlu1 %3509, %v3849_v24   ;;  %v1102_v24 = vld [vmem:[#allocation2 + $0x368] sm:$0xff] }
 0x2d2   :  { %3256 = vmatpush3.bf16.msra.mxu1 %v3253_v34  ;;  %3288 = vmatpush3.bf16.msra.mxu0 %v3285_v38  ;;  %v3349_v34 = vpack.c.bf16 %v1226_v42, %v1225_v40  ;;  %v1101_v38 = vld [vmem:[#allocation2 + $0x360] sm:$0xff] }
 0x2d3   :  { %3258 = vmatprep.subr.bf16.mxu1 %v3257_v23  ;;  %3290 = vmatprep.subr.bf16.mxu0 %v3289_v19  ;;  %v3321_v47 = vpack.c.bf16 %v1102_v24, %v1101_v38 }
 0x2d5   :  { %1329 = vperm.xlu1 %3509, %v3857_v26  }
 0x2d6   :  { %3260 = vmatpush3.bf16.msra.mxu1 %v3257_v23  ;;  %3292 = vmatpush3.bf16.msra.mxu0 %v3289_v19  ;;  %v1103_v23 = vld [vmem:[#allocation2 + $0x370] sm:$0xff]  ;;  %v1104_v19 = vld [vmem:[#allocation2 + $0x378] sm:$0xff] }
 0x2d7   :  { %3262 = vmatprep.subr.bf16.mxu1 %v3261_v56  ;;  %3294 = vmatprep.subr.bf16.mxu0 %v3293_v57  ;;  %v3325_v54 = vpack.c.bf16 %v1104_v19, %v1103_v23 }
 0x2d9   :  { %3510 = vset.pattern.permute.xlu1 %v3629_v32 }
 0x2da   :  { %3264 = vmatpush3.bf16.msra.mxu1 %v3261_v56  ;;  %3296 = vmatpush3.bf16.msra.mxu0 %v3293_v57  ;;  %v1341_v56 = vld [vmem:[#allocation2 + $0x400] sm:$0xff]  ;;  %v1342_v57 = vld [vmem:[#allocation2 + $0x408] sm:$0xff] }
 0x2db   :  { %3298 = vmatprep.subr.bf16.mxu1 %v3297_v6  ;;  %3330 = vmatprep.subr.bf16.mxu0 %v3329_v7 }
 0x2dc   :  { %1455 = vperm.xlu1 %3510, %v3857_v26   ;;  %v3361_v26 = vpack.c.bf16 %v1342_v57, %v1341_v56 }
 0x2dd   :  { %2851 = vmatmul.mubr.f32.vlgmr.msra.gmra.mrb[8].mxu1 %v3884_v52  ;;  %2889 = vmatmul.mubr.f32.vlgmr.msra.gmra.mrb[12].mxu0 %v3884_v52 }
 0x2de   :  { %2853 = vmatprep.mubr.f32.mxu1 %v3901_v45  ;;  %2891 = vmatprep.mubr.f32.mxu0 %v3901_v45 }
 0x2df   :  { %3300 = vmatpush3.bf16.msra.mxu1 %v3297_v6  ;;  %3332 = vmatpush3.bf16.msra.mxu0 %v3329_v7  ;;  %v1345_v6 = vld [vmem:[#allocation2 + $0x420] sm:$0xff]  ;;  %v1346_v7 = vld [vmem:[#allocation2 + $0x428] sm:$0xff] }
 0x2e0   :  { %3302 = vmatprep.subr.bf16.mxu1 %v3301_v8  ;;  %3334 = vmatprep.subr.bf16.mxu0 %v3333_v3  ;;  %v3369_v62 = vpack.c.bf16 %v1346_v7, %v1345_v6 }
 0x2e1   :  { %2854 = vmatmul.mubr.f32.gmra.mrb[10].mxu1 %v3907_v53  ;;  %2892 = vmatmul.mubr.f32.gmra.mrb[14].mxu0 %v3907_v53 }
 0x2e2   :  { %2926 = vmatprep.mubr.f32.mxu1 %v3879_v25  ;;  %2964 = vmatprep.mubr.f32.mxu0 %v3879_v25 }
 0x2e3   :  { %3304 = vmatpush3.bf16.msra.mxu1 %v3301_v8  ;;  %3336 = vmatpush3.bf16.msra.mxu0 %v3333_v3  ;;  %v1349_v8 = vld [vmem:[#allocation2 + $0x440] sm:$0xff]  ;;  %v1350_v3 = vld [vmem:[#allocation2 + $0x448] sm:$0xff] }
 0x2e4   :  { %3306 = vmatprep.subr.bf16.mxu1 %v3305_v14  ;;  %3338 = vmatprep.subr.bf16.mxu0 %v3337_v15  ;;  %v3377_v9 = vpack.c.bf16 %v1350_v3, %v1349_v8 }
 0x2e5   :  { %3512 = vset.pattern.permute.xlu1 %v3626_v30  ;;  %v3365_v30 = vpack.c.bf16 %v1344_v60, %v1343_v59 }
 0x2e6   :  { %1471 = vperm.xlu1 %3512, %v3958_v58  }
 0x2e7   :  { %3308 = vmatpush3.bf16.msra.mxu1 %v3305_v14  ;;  %3340 = vmatpush3.bf16.msra.mxu0 %v3337_v15  ;;  %v1353_v14 = vld [vmem:[#allocation2 + $0x460] sm:$0xff]  ;;  %v1354_v15 = vld [vmem:[#allocation2 + $0x468] sm:$0xff] }
 0x2e8   :  { %3310 = vmatprep.subr.bf16.mxu1 %v3309_v20  ;;  %3342 = vmatprep.subr.bf16.mxu0 %v3341_v21  ;;  %v3385_v17 = vpack.c.bf16 %v1354_v15, %v1353_v14 }
 0x2ea   :  { %1475 = vperm.xlu1 %3512, %v3964_v61  }
 0x2eb   :  { %3312 = vmatpush3.bf16.msra.mxu1 %v3309_v20  ;;  %3344 = vmatpush3.bf16.msra.mxu0 %v3341_v21  ;;  %v562_v20 = vpop.permute.xlu1 %561 }
 0x2ec   :  { %3314 = vmatprep.subr.bf16.mxu1 %v3313_v41  ;;  %3346 = vmatprep.subr.bf16.mxu0 %v3345_v33 }
 0x2ee   :  { %3513 = vset.pattern.permute.xlu1 %v3628_v49 }
 0x2ef   :  { %3316 = vmatpush3.bf16.msra.mxu1 %v3313_v41  ;;  %3348 = vmatpush3.bf16.msra.mxu0 %v3345_v33  ;;  %v566_v21 = vpop.permute.xlu1 %565 }
 0x2f0   :  { %3318 = vmatprep.subr.bf16.mxu1 %v3317_v43  ;;  %3350 = vmatprep.subr.bf16.mxu0 %v3349_v34 }
 0x2f3   :  { %3320 = vmatpush3.bf16.msra.mxu1 %v3317_v43  ;;  %3352 = vmatpush3.bf16.msra.mxu0 %v3349_v34  ;;  %v692_v27 = vpop.permute.xlu1 %691 }
 0x2f4   :  { %3322 = vmatprep.subr.bf16.mxu1 %v3321_v47  ;;  %3354 = vmatprep.subr.bf16.mxu0 %v3353_v48 }
 0x2f7   :  { %3324 = vmatpush3.bf16.msra.mxu1 %v3321_v47  ;;  %3356 = vmatpush3.bf16.msra.mxu0 %v3353_v48  ;;  %v443_v28 = vpop.permute.xlu1 %442 }
 0x2f8   :  { %3326 = vmatprep.subr.bf16.mxu1 %v3325_v54  ;;  %3358 = vmatprep.subr.bf16.mxu0 %v3357_v55 }
 0x2fb   :  { %3328 = vmatpush3.bf16.msra.mxu1 %v3325_v54  ;;  %3360 = vmatpush3.bf16.msra.mxu0 %v3357_v55  ;;  %v570_v29 = vpop.permute.xlu1 %569 }
 0x2fc   :  { %3362 = vmatprep.subr.bf16.mxu1 %v3361_v26 }
 0x2fe   :  { %2927 = vmatmul.mubr.f32.vlgmr.msra.gmra.mrb[12].mxu1 %v3884_v52  ;;  %2965 = vmatmul.mubr.f32.vlgmr.msra.gmra.mrb[16].mxu0 %v3884_v52 }
 0x2ff   :  { %2929 = vmatprep.mubr.f32.mxu1 %v3901_v45  ;;  %2967 = vmatprep.mubr.f32.mxu0 %v3901_v45 }
 0x300   :  { %3364 = vmatpush3.bf16.msra.mxu1 %v3361_v26 }
 0x301   :  { %3366 = vmatprep.subr.bf16.mxu1 %v3365_v30 }
 0x302   :  { %2930 = vmatmul.mubr.f32.gmra.mrb[14].mxu1 %v3907_v53  ;;  %2968 = vmatmul.mubr.f32.gmra.mrb[18].mxu0 %v3907_v53 }
 0x303   :  { %3002 = vmatprep.mubr.f32.mxu1 %v3879_v25  ;;  %v1356_v25 = vld [vmem:[#allocation2 + $0x478] sm:$0xff] }
 0x304   :  { %3368 = vmatpush3.bf16.msra.mxu1 %v3365_v30  ;;  %v3389_v18 = vpack.c.bf16 %v1356_v25, %v1355_v22 }
 0x305   :  { %3370 = vmatprep.subr.bf16.mxu1 %v3369_v62 }
 0x308   :  { %3372 = vmatpush3.bf16.msra.mxu1 %v3369_v62 }
 0x309   :  { %3374 = vmatprep.subr.bf16.mxu1 %v3373_v2 }
 0x30c   :  { %3376 = vmatpush3.bf16.msra.mxu1 %v3373_v2 }
 0x30d   :  { %3378 = vmatprep.subr.bf16.mxu1 %v3377_v9 }
 0x310   :  { %3380 = vmatpush3.bf16.msra.mxu1 %v3377_v9 }
 0x311   :  { %3382 = vmatprep.subr.bf16.mxu1 %v3381_v13 }
 0x314   :  { %3384 = vmatpush3.bf16.msra.mxu1 %v3381_v13 }
 0x315   :  { %3386 = vmatprep.subr.bf16.mxu1 %v3385_v17 }
 0x318   :  { %3388 = vmatpush3.bf16.msra.mxu1 %v3385_v17 }
 0x319   :  { %3390 = vmatprep.subr.bf16.mxu1 %v3389_v18 }
 0x31c   :  { %3392 = vmatpush3.bf16.msra.mxu1 %v3389_v18 }
 0x31f   :  { %3003 = vmatmul.mubr.f32.vlgmr.msra.gmra.mrb[16].mxu1 %v3884_v52 }
 0x320   :  { %3005 = vmatprep.mubr.f32.mxu1 %v3901_v45  ;;  %v574_v45 = vpop.permute.xlu1 %573 }
 0x323   :  { %3006 = vmatmul.mubr.f32.gmra.mrb[18].mxu1 %v3907_v53  ;;  %v448_v53 = vpop.permute.xlu0 %447 }
 0x324   :  { %v818_v24 = vpop.permute.xlu1 %817 }
 0x327   :  { %v688_v16 = vpop.permute.xlu0 %687 }
 0x328   :  { %v696_v46 = vpop.permute.xlu1 %695 }
 0x32b   :  { %v700_v48 = vpop.permute.xlu0 %699 }
 0x32c   :  { %v940_v47 = vpop.permute.xlu1 %939 }
 0x32f   :  { %v814_v30 = vpop.permute.xlu0 %813 }
 0x330   :  { %v944_v60 = vpop.permute.xlu1 %943 }
 0x333   :  { %v822_v10 = vpop.permute.xlu0 %821 }
 0x334   :  { %v826_v9 = vpop.permute.xlu1 %825 }
 0x36f   :  { %v2700_v41 = vpop.f32.mrb[0].mxu1  ;;  %v2738_v33 = vpop.f32.mrb[4].mxu0 }
 0x370   :  { %v577_v35 = vmul.f32 %v2738_v33, %v566_v21  ;;  %v451_v39 = vmul.f32 %v2700_v41, %v438_v31  ;;  %v407_v40 = vpop.f32.mrb[1].mxu1  ;;  %v541_v42 = vpop.f32.mrb[5].mxu0 }
 0x371   :  { %v450_v43 = vmul.f32 %v433_v4, %v407_v40  ;;  %v576_v34 = vmul.f32 %v562_v20, %v541_v42  ;;  %v1066_v33 = vpop.permute.xlu1 %1065  ;;  %v1070_v42 = vpop.permute.xlu0 %1069 }
 0x372   :  { %v581_v52 = vadd.f32 %v577_v35, %v451_v39 }
 0x373   :  { %v580_v38 = vadd.f32 %v576_v34, %v450_v43 }
 0x375   :  { %v948_v35 = vpop.permute.xlu1 %947 }
 0x379   :  { %v952_v39 = vpop.permute.xlu1 %951 }
 0x37d   :  { %v1196_v40 = vpop.permute.xlu1 %1195 }
 0x387   :  { %v2703_v23 = vpop.f32.mrb[2].mxu1  ;;  %v2741_v19 = vpop.f32.mrb[6].mxu0 }
 0x388   :  { %v453_v50 = vmul.f32 %v2703_v23, %v448_v53  ;;  %v579_v51 = vmul.f32 %v2741_v19, %v574_v45  ;;  %v417_v54 = vpop.f32.mrb[3].mxu1  ;;  %v551_v55 = vpop.f32.mrb[7].mxu0 }
 0x389   :  { %v452_v56 = vmul.f32 %v443_v28, %v417_v54  ;;  %v578_v57 = vmul.f32 %v570_v29, %v551_v55  ;;  %v1074_v53 = vpop.permute.xlu1 %1073 }
 0x38a   :  { %v583_v26 = vadd.f32 %v579_v51, %v453_v50 }
 0x38b   :  { %v582_v59 = vadd.f32 %v578_v57, %v452_v56 }
 0x38f   :  { %v2776_v6 = vpop.f32.mrb[4].mxu1  ;;  %v2814_v7 = vpop.f32.mrb[8].mxu0 }
 0x390   :  { %v703_v62 = vmul.f32 %v2776_v6, %v692_v27  ;;  %v667_v0 = vpop.f32.mrb[5].mxu1  ;;  %v793_v1 = vpop.f32.mrb[9].mxu0  ;;  %v829_v3 = vmul.f32 %v2814_v7, %v818_v24 }
 0x391   :  { %v702_v2 = vmul.f32 %v688_v16, %v667_v0  ;;  %v828_v13 = vmul.f32 %v814_v30, %v793_v1  ;;  %v1318_v30 = vpop.permute.xlu1 %1317 }
 0x392   :  { %v707_v8 = vadd.f32 %v703_v62, %v581_v52 }
 0x393   :  { %v706_v11 = vadd.f32 %v702_v2, %v580_v38  ;;  %v2779_v14 = vpop.f32.mrb[6].mxu1  ;;  %v2817_v15 = vpop.f32.mrb[10].mxu0 }
 0x394   :  { %v833_v17 = vadd.f32 %v829_v3, %v707_v8  ;;  %v705_v22 = vmul.f32 %v2779_v14, %v700_v48  ;;  %v677_v25 = vpop.f32.mrb[7].mxu1  ;;  %v803_v18 = vpop.f32.mrb[11].mxu0  ;;  %v831_v28 = vmul.f32 %v2817_v15, %v826_v9 }
 0x395   :  { %v832_v4 = vadd.f32 %v828_v13, %v706_v11  ;;  %v704_v20 = vmul.f32 %v696_v46, %v677_v25  ;;  %v830_v31 = vmul.f32 %v822_v10, %v803_v18  ;;  %v1078_v48 = vpop.permute.xlu0 %1077  ;;  %v1322_v1 = vpop.permute.xlu1 %1321 }
 0x396   :  { %v709_v21 = vadd.f32 %v705_v22, %v583_v26 }
 0x397   :  { %v708_v27 = vadd.f32 %v704_v20, %v582_v59 }
 0x398   :  { %v835_v29 = vadd.f32 %v831_v28, %v709_v21 }
 0x399   :  { %v834_v41 = vadd.f32 %v830_v31, %v708_v27  ;;  %v1204_v2 = vpop.permute.xlu1 %1203  ;;  %v1192_v9 = vpop.permute.xlu0 %1191 }
 0x39d   :  { %v1444_v8 = vpop.permute.xlu1 %1443 }
 0x3a1   :  { %v1326_v3 = vpop.permute.xlu1 %1325 }
 0x3a5   :  { %v1330_v18 = vpop.permute.xlu1 %1329 }
 0x3b0   :  { %v2852_v43 = vpop.f32.mrb[8].mxu1  ;;  %v2890_v34 = vpop.f32.mrb[12].mxu0 }
 0x3b1   :  { %v955_v52 = vmul.f32 %v2852_v43, %v944_v60  ;;  %v919_v38 = vpop.f32.mrb[9].mxu1  ;;  %v1045_v45 = vpop.f32.mrb[13].mxu0  ;;  %v1081_v46 = vmul.f32 %v2890_v34, %v1070_v42 }
 0x3b2   :  { %v954_v24 = vmul.f32 %v940_v47, %v919_v38  ;;  %v1080_v19 = vmul.f32 %v1066_v33, %v1045_v45 }
 0x3b3   :  { %v959_v16 = vadd.f32 %v955_v52, %v833_v17 }
 0x3b4   :  { %v958_v23 = vadd.f32 %v954_v24, %v832_v4  ;;  %v2855_v50 = vpop.f32.mrb[10].mxu1  ;;  %v2893_v51 = vpop.f32.mrb[14].mxu0 }
 0x3b5   :  { %v1085_v54 = vadd.f32 %v1081_v46, %v959_v16  ;;  %v957_v55 = vmul.f32 %v2855_v50, %v952_v39  ;;  %v929_v56 = vpop.f32.mrb[11].mxu1  ;;  %v1055_v57 = vpop.f32.mrb[15].mxu0  ;;  %v1083_v60 = vmul.f32 %v2893_v51, %v1078_v48 }
 0x3b6   :  { %v1084_v26 = vadd.f32 %v1080_v19, %v958_v23  ;;  %v956_v59 = vmul.f32 %v948_v35, %v929_v56  ;;  %v1082_v62 = vmul.f32 %v1074_v53, %v1055_v57  ;;  %v1200_v4 = vpop.permute.xlu0 %1199  ;;  %v1456_v24 = vpop.permute.xlu1 %1455 }
 0x3b7   :  { %v961_v6 = vadd.f32 %v957_v55, %v835_v29 }
 0x3b8   :  { %v960_v7 = vadd.f32 %v956_v59, %v834_v41 }
 0x3b9   :  { %v1087_v47 = vadd.f32 %v1083_v60, %v961_v6 }
 0x3ba   :  { %v1086_v0 = vadd.f32 %v1082_v62, %v960_v7  ;;  %v1448_v45 = vpop.permute.xlu0 %1447  ;;  %v1472_v19 = vpop.permute.xlu1 %1471 }
 0x3be   :  { %v1452_v53 = vpop.permute.xlu0 %1451 }
 0x3c2   :  { %v1468_v55 = vpop.permute.xlu0 %1467 }
 0x3d1   :  { %v2928_v10 = vpop.f32.mrb[12].mxu1  ;;  %v2966_v11 = vpop.f32.mrb[16].mxu0 }
 0x3d2   :  { %v1207_v13 = vmul.f32 %v2928_v10, %v1196_v40  ;;  %v1171_v14 = vpop.f32.mrb[13].mxu1  ;;  %v1297_v15 = vpop.f32.mrb[17].mxu0  ;;  %v1333_v25 = vmul.f32 %v2966_v11, %v1322_v1  ;;  %v4014_v10 = vld [vmem:[%s4348_s7 + $0x18] sm:$0xff] }
 0x3d3   :  { %v1206_v17 = vmul.f32 %v1192_v9, %v1171_v14  ;;  %v1332_v20 = vmul.f32 %v1318_v30, %v1297_v15  ;;  %v4001_v9 = vld [vmem:[%s4348_s7] sm:$0xff] }
 0x3d4   :  { %v1211_v22 = vadd.f32 %v1207_v13, %v1085_v54 }
 0x3d5   :  { %v1210_v21 = vadd.f32 %v1206_v17, %v1084_v26  ;;  %v2931_v28 = vpop.f32.mrb[14].mxu1  ;;  %v2969_v27 = vpop.f32.mrb[18].mxu0 }
 0x3d6   :  { %v1337_v31 = vadd.f32 %v1333_v25, %v1211_v22  ;;  %v1209_v29 = vmul.f32 %v2931_v28, %v1204_v2  ;;  %v1181_v41 = vpop.f32.mrb[15].mxu1  ;;  %v1307_v33 = vpop.f32.mrb[19].mxu0  ;;  %v1335_v43 = vmul.f32 %v2969_v27, %v1330_v18 }
 0x3d7   :  { %v1208_v35 = vmul.f32 %v1200_v4, %v1181_v41  ;;  %v1336_v39 = vadd.f32 %v1332_v20, %v1210_v21  ;;  %v1334_v40 = vmul.f32 %v1326_v3, %v1307_v33 }
 0x3d8   :  { %v1213_v42 = vadd.f32 %v1209_v29, %v1087_v47  ;;  %v1476_v47 = vpop.permute.xlu1 %1475 }
 0x3d9   :  { %v1212_v34 = vadd.f32 %v1208_v35, %v1086_v0  ;;  %v1480_v0 = vpop.permute.xlu0 %1479 }
 0x3da   :  { %v1339_v52 = vadd.f32 %v1335_v43, %v1213_v42 }
 0x3db   :  { %v1338_v38 = vadd.f32 %v1334_v40, %v1212_v34 }
 0x3f2   :  { %v3004_v16 = vpop.f32.mrb[16].mxu1 }
 0x3f3   :  { %v1459_v46 = vmul.f32 %v3004_v16, %v1448_v45  ;;  %v1423_v48 = vpop.f32.mrb[17].mxu1 }
 0x3f4   :  { %v1458_v23 = vmul.f32 %v1444_v8, %v1423_v48 }
 0x3f5   :  { %v1463_v50 = vadd.f32 %v1459_v46, %v1337_v31 }
 0x3f6   :  { %v1462_v51 = vadd.f32 %v1458_v23, %v1336_v39  ;;  %v3007_v54 = vpop.f32.mrb[18].mxu1 }
 0x3f7   :  { %v3978_v56 = vadd.f32 %v1472_v19, %v1463_v50  ;;  %v1461_v57 = vmul.f32 %v3007_v54, %v1456_v24  ;;  %v1433_v26 = vpop.f32.mrb[19].mxu1 }
 0x3f8   :  { %v3980_v59 = vadd.f32 %v1468_v55, %v1462_v51  ;;  %v1460_v30 = vmul.f32 %v1452_v53, %v1433_v26  ;;  %v1614_v26 = vld [vmem:[%s4345_s4] sm:$0xff] }
 0x3f9   :  { %v1465_v6 = vadd.f32 %v1461_v57, %v1339_v52  ;;  %1488 = vadd.xlane.f32.xlu0 %v3978_v56  ;;  %v1499_v62 = vmul.f32 %v3978_v56, %v3978_v56  ;;  %3016 = vmatprep.mubr.msk.f32.mxu0 %vm1656_vm6, %v1614_v26 }
 0x3fa   :  { %v1464_v60 = vadd.f32 %v1460_v30, %v1338_v38  ;;  %1486 = vadd.xlane.f32.xlu1 %v3980_v59  ;;  %v1498_v7 = vmul.f32 %v3980_v59, %v3980_v59  ;;  %v4051_v30 = vld [vmem:[%s4349_s8] sm:$0xff] }
 0x3fb   :  { %v3990_v2 = vadd.f32 %v1480_v0, %v1465_v6  ;;  %v4074_v6 = vld [vmem:[%s4349_s8 + $0x18] sm:$0xff] }
 0x3fc   :  { %v3988_v1 = vadd.f32 %v1476_v47, %v1464_v60  ;;  %v4081_v60 = vld [vmem:[%s4349_s8 + $0x20] sm:$0xff] }
 0x3fd   :  { %1502 = vadd.xlane.f32.xlu0 %v1498_v7  ;;  %v1501_v3 = vmul.f32 %v3990_v2, %v3990_v2 }
 0x3fe   :  { %1504 = vadd.xlane.f32.xlu1 %v1499_v62  ;;  %v1500_v8 = vmul.f32 %v3988_v1, %v3988_v1 }
 0x401   :  { %1490 = vadd.xlane.f32.xlu0 %v3988_v1 }
 0x402   :  { %1492 = vadd.xlane.f32.xlu1 %v3990_v2 }
 0x405   :  { %1506 = vadd.xlane.f32.xlu0 %v1500_v8 }
 0x406   :  { %1508 = vadd.xlane.f32.xlu1 %v1501_v3 }
 0x417   :  { %1567 = vperm.xlu1 %3513, %v4001_v9  }
 0x41b   :  { %1571 = vperm.xlu1 %3513, %v3958_v58   ;;  %1575 = vperm.xlu0 %3515, %v3964_v61  }
 0x41f   :  { %3514 = vset.pattern.permute.xlu1 %v3630_v44  ;;  %3518 = vset.pattern.permute.xlu0 %v3627_v12 }
 0x420   :  { %1591 = vperm.xlu1 %3514, %v4001_v9  }
 0x424   :  { %1595 = vperm.xlu1 %3514, %v3958_v58  }
 0x428   :  { %3516 = vset.pattern.permute.xlu1 %v3628_v49 }
 0x429   :  { %1579 = vperm.xlu1 %3516, %v4014_v10  }
 0x42d   :  { %3517 = vset.pattern.permute.xlu1 %v3627_v12 }
 0x486   :  { %v1489_v11 = vpop.xlane.xlu0 %1488 }
 0x487   :  { %v1487_v13 = vpop.xlane.xlu1 %1486  ;;  %v4018_v14 = vmul.f32 0.0078125, %v1489_v11 }
 0x488   :  { %v4020_v15 = vmul.f32 0.0078125, %v1487_v13 }
 0x489   :  { %v1515_v18 = vmul.f32 %v4018_v14, %v4018_v14 }
 0x48a   :  { %v1514_v17 = vmul.f32 %v4020_v15, %v4020_v15  ;;  %v1503_v22 = vpop.xlane.xlu0 %1502  ;;  %v1526_v11 = vsub.f32 %v3980_v59, %v4020_v15 }
 0x48b   :  { %v1510_v49 = vmul.f32 0.0078125, %v1503_v22  ;;  %v1505_v25 = vpop.xlane.xlu1 %1504 }
 0x48c   :  { %v1511_v4 = vmul.f32 0.0078125, %v1505_v25 }
 0x48d   :  { %v1518_v20 = vsub.f32 %v1510_v49, %v1514_v17  ;;  %v1527_v17 = vsub.f32 %v3978_v56, %v4018_v14 }
 0x48e   :  { %v1519_v21 = vsub.f32 %v1511_v4, %v1515_v18  ;;  %v1491_v28 = vpop.xlane.xlu0 %1490 }
 0x48f   :  { %v1522_v12 = vmax.f32 %v1518_v20, 0.0  ;;  %v4026_v27 = vmul.f32 0.0078125, %v1491_v28  ;;  %v1493_v31 = vpop.xlane.xlu1 %1492 }
 0x490   :  { %v1523_v29 = vmax.f32 %v1519_v21, 0.0  ;;  %v4028_v41 = vmul.f32 0.0078125, %v1493_v31 }
 0x491   :  { %v1530_v33 = vadd.f32 1e-05, %v1522_v12  ;;  %v1516_v42 = vmul.f32 %v4026_v27, %v4026_v27  ;;  %v1528_v56 = vsub.f32 %v3988_v1, %v4026_v27  ;;  %v1616_v1 = vld [vmem:[%s4345_s4 + $0x10] sm:$0xff]  ;;  %v1617_v27 = vld [vmem:[%s4345_s4 + $0x18] sm:$0xff] }
 0x492   :  { %v1531_v35 = vadd.f32 1e-05, %v1523_v29  ;;  %v1507_v39 = vpop.xlane.xlu0 %1506  ;;  %v1517_v34 = vmul.f32 %v4028_v41, %v4028_v41  ;;  %v1529_v12 = vsub.f32 %v3990_v2, %v4028_v41 }
 0x493   :  { %3544 = vrsqrt.f32 %v1530_v33  ;;  %v1512_v43 = vmul.f32 0.0078125, %v1507_v39  ;;  %v1509_v40 = vpop.xlane.xlu1 %1508 }
 0x494   :  { %3546 = vrsqrt.f32 %v1531_v35  ;;  %v1513_v52 = vmul.f32 0.0078125, %v1509_v40 }
 0x495   :  { %v1520_v38 = vsub.f32 %v1512_v43, %v1516_v42 }
 0x496   :  { %v1521_v45 = vsub.f32 %v1513_v52, %v1517_v34 }
 0x497   :  { %v1524_v24 = vmax.f32 %v1520_v38, 0.0  ;;  %v1568_v7 = vpop.permute.xlu1 %1567  ;;  %v1615_v38 = vld [vmem:[%s4345_s4 + $0x8] sm:$0xff] }
 0x498   :  { %v1525_v53 = vmax.f32 %v1521_v45, 0.0  ;;  %v1618_v45 = vld [vmem:[%s4345_s4 + $0x20] sm:$0xff] }
 0x499   :  { %v1532_v16 = vadd.f32 1e-05, %v1524_v24  ;;  %v1619_v24 = vld [vmem:[%s4345_s4 + $0x28] sm:$0xff] }
 0x49a   :  { %v1533_v46 = vadd.f32 1e-05, %v1525_v53  ;;  %v1576_v8 = vpop.permute.xlu0 %1575 }
 0x49b   :  { %v1572_v62 = vpop.permute.xlu1 %1571 }
 0x49c   :  { %3548 = vrsqrt.f32 %v1533_v46 }
 0x49d   :  { %v3545_v48 = vpop.eup %3544  ;;  %3550 = vrsqrt.f32 %v1532_v16 }
 0x49e   :  { %v3547_v23 = vpop.eup %3546  ;;  %v1538_v19 = vmul.f32 %v4001_v9, %v3545_v48 }
 0x49f   :  { %v1539_v50 = vmul.f32 %v3958_v58, %v3547_v23  ;;  %v1592_v47 = vpop.permute.xlu1 %1591 }
 0x4a0   :  { %1544 = vperm.xlu0 %3518, %v1538_v19  }
 0x4a1   :  { %1549 = vperm.xlu1 %3517, %v1539_v50  }
 0x4a3   :  { %v1596_v0 = vpop.permute.xlu1 %1595 }
 0x4a4   :  { %3520 = vset.pattern.permute.xlu0 %v3630_v44 }
 0x4a5   :  { %1603 = vperm.xlu0 %3520, %v4014_v10  }
 0x4a6   :  { %v3549_v51 = vpop.eup %3548 }
 0x4a7   :  { %v1541_v54 = vmul.f32 %v4014_v10, %v3549_v51  ;;  %v3551_v55 = vpop.eup %3550 }
 0x4a8   :  { %v1540_v57 = vmul.f32 %v3964_v61, %v3551_v55  ;;  %v1580_v3 = vpop.permute.xlu1 %1579 }
 0x4a9   :  { %1559 = vperm.xlu1 %3517, %v1541_v54   ;;  %3522 = vset.pattern.permute.xlu0 %v3622_v5 }
 0x4ad   :  { %1554 = vperm.xlu1 %3517, %v1540_v57  }
 0x4b1   :  { %3519 = vset.pattern.permute.xlu1 %v3630_v44  ;;  %v4057_v44 = vld [vmem:[%s4349_s8 + $0x10] sm:$0xff] }
 0x4b2   :  { %1599 = vperm.xlu1 %3519, %v3964_v61   ;;  %1638 = vperm.xlu0 %3522, %v4057_v44   ;;  %v4068_v61 = vld [vmem:[%s4349_s8 + $0x28] sm:$0xff] }
 0x4b6   :  { %3521 = vset.pattern.permute.xlu1 %v3622_v5  ;;  %v4062_v5 = vld [vmem:[%s4349_s8 + $0x8] sm:$0xff]  ;;  %1653 = vperm.xlu0 %3522, %v4068_v61  }
 0x4b7   :  { %1628 = vperm.xlu1 %3521, %v4051_v30  }
 0x4ba   :  { %3525 = vset.pattern.permute.xlu0 %v3624_v37 }
 0x4bb   :  { %1633 = vperm.xlu1 %3521, %v4062_v5  }
 0x4bf   :  { %1643 = vperm.xlu1 %3521, %v4074_v6  }
 0x4c3   :  { %1648 = vperm.xlu1 %3521, %v4081_v60  }
 0x4c7   :  { %3523 = vset.pattern.permute.xlu1 %v3623_v36 }
 0x51f   :  { %v1545_v13 = vpop.permute.xlu0 %1544 }
 0x520   :  { %v1562_v22 = vmul.f32 %v1545_v13, %v1526_v11  ;;  %v1550_v49 = vpop.permute.xlu1 %1549 }
 0x521   :  { %v1563_v25 = vmul.f32 %v1550_v49, %v1527_v17 }
 0x522   :  { %v1582_v18 = vadd.f32 %v1568_v7, %v1562_v22 }
 0x523   :  { %v1583_v4 = vadd.f32 %v1572_v62, %v1563_v25 }
 0x524   :  { %vm1586_vm7 = vcmp.ge.f32.partialorder %v1582_v18, 0.0  ;;  %v1606_v20 = vmul.f32 %v1592_v47, %v1582_v18  ;;  %v1604_v39 = vpop.permute.xlu0 %1603 }
 0x525   :  { %vm1587_vm8 = vcmp.ge.f32.partialorder %v1583_v4, 0.0  ;;  %v1607_v21 = vmul.f32 %v1596_v0, %v1583_v4 }
 0x526   :  { %v1610_v28 = vsel %vm1586_vm7, %v1582_v18, %v1606_v20  ;;  %v1920_v18 = vld [vmem:[%s4351_s10] sm:$0xff]  ;;  %v1922_v20 = vld [vmem:[%s4351_s10 + $0x10] sm:$0xff] }
 0x527   :  { %v1611_v31 = vsel %vm1587_vm8, %v1583_v4, %v1607_v21  ;;  %v1921_v4 = vld [vmem:[%s4351_s10 + $0x8] sm:$0xff] }
 0x528   :  { %v1560_v29 = vpop.permute.xlu1 %1559  ;;  %v3393_v59 = vpack.c.bf16 %v1611_v31, %v1610_v28  ;;  %v3401_v21 = vpack.c.bf16 %v1921_v4, %v1920_v18  ;;  %v1923_v28 = vld [vmem:[%s4351_s10 + $0x18] sm:$0xff]  ;;  %v1925_v31 = vld [vmem:[%s4351_s10 + $0x28] sm:$0xff] }
 0x529   :  { %v1565_v15 = vmul.f32 %v1560_v29, %v1529_v12  ;;  %v3405_v12 = vpack.c.bf16 %v1923_v28, %v1922_v20 }
 0x52a   :  { %3394 = vmatprep.subr.bf16.mxu0 %v3393_v59 }
 0x52b   :  { %3396 = vmatpush3.bf16.msra.mxu0 %v3393_v59  ;;  %v1585_v14 = vadd.f32 %v1580_v3, %v1565_v15  ;;  %v1926_v59 = vld [vmem:[%s4351_s10 + $0x30] sm:$0xff]  ;;  %v1927_v15 = vld [vmem:[%s4351_s10 + $0x38] sm:$0xff] }
 0x52c   :  { %v1555_v33 = vpop.permute.xlu1 %1554 }
 0x52d   :  { %v1564_v35 = vmul.f32 %v1555_v33, %v1528_v56  ;;  %v1609_v43 = vmul.f32 %v1604_v39, %v1585_v14  ;;  %vm1589_vm9 = vcmp.ge.f32.partialorder %v1585_v14, 0.0  ;;  %v3413_v56 = vpack.c.bf16 %v1927_v15, %v1926_v59  ;;  %v1929_v33 = vld [vmem:[%s4351_s10 + $0x48] sm:$0xff]  ;;  %v1930_v39 = vld [vmem:[%s4351_s10 + $0x50] sm:$0xff] }
 0x52f   :  { %v1584_v42 = vadd.f32 %v1576_v8, %v1564_v35  ;;  %v1613_v41 = vsel %vm1589_vm9, %v1585_v14, %v1609_v43  ;;  %v1928_v14 = vld [vmem:[%s4351_s10 + $0x40] sm:$0xff] }
 0x530   :  { %v3417_v35 = vpack.c.bf16 %v1929_v33, %v1928_v14 }
 0x531   :  { %v1600_v40 = vpop.permute.xlu1 %1599  ;;  %vm1588_vm10 = vcmp.ge.f32.partialorder %v1584_v42, 0.0  ;;  %v1639_v55 = vpop.permute.xlu0 %1638 }
 0x532   :  { %v1608_v34 = vmul.f32 %v1600_v40, %v1584_v42  ;;  %v1932_v40 = vld [vmem:[%s4351_s10 + $0x60] sm:$0xff] }
 0x534   :  { %v1612_v2 = vsel %vm1588_vm10, %v1584_v42, %v1608_v34  ;;  %v1931_v42 = vld [vmem:[%s4351_s10 + $0x58] sm:$0xff]  ;;  %v1933_v34 = vld [vmem:[%s4351_s10 + $0x68] sm:$0xff] }
 0x535   :  { %v3397_v52 = vpack.c.bf16 %v1613_v41, %v1612_v2  ;;  %v1654_v11 = vpop.permute.xlu0 %1653  ;;  %v3421_v43 = vpack.c.bf16 %v1931_v42, %v1930_v39  ;;  %v3425_v2 = vpack.c.bf16 %v1933_v34, %v1932_v40 }
 0x536   :  { %v1629_v53 = vpop.permute.xlu1 %1628 }
 0x537   :  { %3398 = vmatprep.subr.bf16.mxu0 %v3397_v52 }
 0x538   :  { %3400 = vmatpush3.bf16.msra.mxu0 %v3397_v52 }
 0x539   :  { %3402 = vmatprep.subr.bf16.mxu0 %v3401_v21 }
 0x53a   :  { %v1634_v16 = vpop.permute.xlu1 %1633 }
 0x53b   :  { %3017 = vmatmul.mubr.msk.f32.vlgmr.msra.gmra.mrb[20].mxu0 %vm1656_vm6, %v1615_v38 }
 0x53c   :  { %3019 = vmatprep.mubr.msk.f32.mxu0 %vm1656_vm6, %v1616_v1  ;;  %3404 = vmatpush3.bf16.msra.mxu0 %v3401_v21 }
 0x53d   :  { %3406 = vmatprep.subr.bf16.mxu0 %v3405_v12 }
 0x53e   :  { %v1644_v62 = vpop.permute.xlu1 %1643 }
 0x53f   :  { %3020 = vmatmul.mubr.msk.f32.gmra.mrb[22].mxu0 %vm1656_vm6, %v1617_v27 }
 0x540   :  { %3022 = vmatprep.mubr.msk.f32.mxu0 %vm1656_vm6, %v1618_v45  ;;  %3408 = vmatpush3.bf16.msra.mxu0 %v3405_v12 }
 0x542   :  { %v1649_v13 = vpop.permute.xlu1 %1648 }
 0x543   :  { %3023 = vmatmul.mubr.msk.f32.gmra.mrb[24].mxu0 %vm1656_vm6, %v1619_v24 }
 0x60e   :  { %v3018_v46 = vpop.f32.mrb[20].mxu0 }
 0x60f   :  { %v4114_v48 = vadd.f32 %v3018_v46, %v1634_v16  ;;  %v1741_v23 = vpop.f32.mrb[21].mxu0 }
 0x610   :  { %v4116_v19 = vadd.f32 %v1741_v23, %v1629_v53 }
 0x611   :  { %1772 = vadd.xlane.f32.xlu0 %v4114_v48  ;;  %v1789_v57 = vmul.f32 %v4114_v48, %v4114_v48 }
 0x612   :  { %v3021_v50 = vpop.f32.mrb[22].mxu0  ;;  %1770 = vadd.xlane.f32.xlu1 %v4116_v19  ;;  %v1788_v51 = vmul.f32 %v4116_v19, %v4116_v19 }
 0x613   :  { %v1751_v54 = vpop.f32.mrb[23].mxu0  ;;  %v4126_v0 = vadd.f32 %v3021_v50, %v1644_v62 }
 0x614   :  { %v4124_v26 = vadd.f32 %v1751_v54, %v1639_v55 }
 0x615   :  { %1794 = vadd.xlane.f32.xlu0 %v1788_v51  ;;  %v1791_v3 = vmul.f32 %v4126_v0, %v4126_v0 }
 0x616   :  { %v3024_v7 = vpop.f32.mrb[24].mxu0  ;;  %1796 = vadd.xlane.f32.xlu1 %v1789_v57  ;;  %v1790_v8 = vmul.f32 %v4124_v26, %v4124_v26 }
 0x617   :  { %v1761_v47 = vpop.f32.mrb[25].mxu0  ;;  %v4136_v22 = vadd.f32 %v3024_v7, %v1654_v11 }
 0x618   :  { %v4134_v17 = vadd.f32 %v1761_v47, %v1649_v13 }
 0x619   :  { %1774 = vadd.xlane.f32.xlu0 %v4124_v26  ;;  %v1793_v25 = vmul.f32 %v4136_v22, %v4136_v22 }
 0x61a   :  { %1776 = vadd.xlane.f32.xlu1 %v4126_v0  ;;  %v1792_v49 = vmul.f32 %v4134_v17, %v4134_v17 }
 0x61d   :  { %1798 = vadd.xlane.f32.xlu0 %v1790_v8 }
 0x61e   :  { %1800 = vadd.xlane.f32.xlu1 %v1791_v3 }
 0x621   :  { %1778 = vadd.xlane.f32.xlu0 %v4134_v17 }
 0x622   :  { %1780 = vadd.xlane.f32.xlu1 %v4136_v22 }
 0x625   :  { %1802 = vadd.xlane.f32.xlu0 %v1792_v49 }
 0x626   :  { %1804 = vadd.xlane.f32.xlu1 %v1793_v25 }
 0x637   :  { %1891 = vperm.xlu1 %3523, %v4051_v30  }
 0x63b   :  { %1895 = vperm.xlu1 %3523, %v4062_v5  }
 0x63f   :  { %1899 = vperm.xlu1 %3523, %v4057_v44  }
 0x643   :  { %1903 = vperm.xlu1 %3523, %v4074_v6  }
 0x647   :  { %3524 = vset.pattern.permute.xlu1 %v3624_v37  ;;  %v1924_v37 = vld [vmem:[%s4351_s10 + $0x20] sm:$0xff] }
 0x648   :  { %v3409_v29 = vpack.c.bf16 %v1925_v31, %v1924_v37 }
 0x64a   :  { %3410 = vmatprep.subr.bf16.mxu0 %v3409_v29 }
 0x64b   :  { %3412 = vmatpush3.bf16.msra.mxu0 %v3409_v29 }
 0x64c   :  { %3414 = vmatprep.subr.bf16.mxu0 %v3413_v56 }
 0x64f   :  { %3416 = vmatpush3.bf16.msra.mxu0 %v3413_v56 }
 0x650   :  { %3418 = vmatprep.subr.bf16.mxu0 %v3417_v35 }
 0x653   :  { %3420 = vmatpush3.bf16.msra.mxu0 %v3417_v35 }
 0x654   :  { %3422 = vmatprep.subr.bf16.mxu0 %v3421_v43 }
 0x657   :  { %3424 = vmatpush3.bf16.msra.mxu0 %v3421_v43 }
 0x658   :  { %3426 = vmatprep.subr.bf16.mxu0 %v3425_v2 }
 0x65b   :  { %3428 = vmatpush3.bf16.msra.mxu0 %v3425_v2 }
 0x69e   :  { %v1773_v41 = vpop.xlane.xlu0 %1772 }
 0x69f   :  { %v1771_v52 = vpop.xlane.xlu1 %1770  ;;  %v4191_v38 = vmul.f32 0.0078125, %v1773_v41 }
 0x6a0   :  { %v4193_v1 = vmul.f32 0.0078125, %v1771_v52  ;;  %v1934_v52 = vld [vmem:[%s4351_s10 + $0x70] sm:$0xff] }
 0x6a1   :  { %v1813_v16 = vmul.f32 %v4191_v38, %v4191_v38 }
 0x6a2   :  { %v1812_v27 = vmul.f32 %v4193_v1, %v4193_v1  ;;  %v1795_v45 = vpop.xlane.xlu0 %1794 }
 0x6a3   :  { %v1806_v24 = vmul.f32 0.0078125, %v1795_v45  ;;  %v1797_v53 = vpop.xlane.xlu1 %1796 }
 0x6a4   :  { %v1807_v46 = vmul.f32 0.0078125, %v1797_v53 }
 0x6a5   :  { %v1818_v23 = vsub.f32 %v1806_v24, %v1812_v27  ;;  %v1935_v27 = vld [vmem:[%s4351_s10 + $0x78] sm:$0xff] }
 0x6a6   :  { %v1819_v50 = vsub.f32 %v1807_v46, %v1813_v16  ;;  %v1775_v51 = vpop.xlane.xlu0 %1774  ;;  %v3429_v53 = vpack.c.bf16 %v1935_v27, %v1934_v52 }
 0x6a7   :  { %v1824_v54 = vmax.f32 %v1818_v23, 0.0  ;;  %v4199_v55 = vmul.f32 0.0078125, %v1775_v51  ;;  %v1777_v57 = vpop.xlane.xlu1 %1776 }
 0x6a8   :  { %v1825_v7 = vmax.f32 %v1819_v50, 0.0  ;;  %v4201_v62 = vmul.f32 0.0078125, %v1777_v57  ;;  %3430 = vmatprep.subr.bf16.mxu0 %v3429_v53 }
 0x6a9   :  { %v1836_v47 = vadd.f32 1e-05, %v1824_v54  ;;  %v1814_v11 = vmul.f32 %v4199_v55, %v4199_v55  ;;  %3432 = vmatpush3.bf16.msra.mxu0 %v3429_v53 }
 0x6aa   :  { %v1837_v8 = vadd.f32 1e-05, %v1825_v7  ;;  %v1799_v3 = vpop.xlane.xlu0 %1798  ;;  %v1815_v25 = vmul.f32 %v4201_v62, %v4201_v62 }
 0x6ab   :  { %3552 = vrsqrt.f32 %v1836_v47  ;;  %v1808_v13 = vmul.f32 0.0078125, %v1799_v3  ;;  %v1801_v49 = vpop.xlane.xlu1 %1800 }
 0x6ac   :  { %3554 = vrsqrt.f32 %v1837_v8  ;;  %v1809_v18 = vmul.f32 0.0078125, %v1801_v49 }
 0x6ad   :  { %v1820_v4 = vsub.f32 %v1808_v13, %v1814_v11 }
 0x6ae   :  { %v1821_v20 = vsub.f32 %v1809_v18, %v1815_v25  ;;  %v1779_v21 = vpop.xlane.xlu0 %1778  ;;  %v1830_v18 = vsub.f32 %v4116_v19, %v4193_v1  ;;  %v1832_v19 = vsub.f32 %v4124_v26, %v4199_v55 }
 0x6af   :  { %v1826_v28 = vmax.f32 %v1820_v4, 0.0  ;;  %v4207_v12 = vmul.f32 0.0078125, %v1779_v21  ;;  %v1781_v37 = vpop.xlane.xlu1 %1780 }
 0x6b0   :  { %v1827_v31 = vmax.f32 %v1821_v20, 0.0  ;;  %v4209_v29 = vmul.f32 0.0078125, %v1781_v37 }
 0x6b1   :  { %v1838_v59 = vadd.f32 1e-05, %v1826_v28  ;;  %v1816_v14 = vmul.f32 %v4207_v12, %v4207_v12 }
 0x6b2   :  { %v1839_v15 = vadd.f32 1e-05, %v1827_v31  ;;  %v1803_v56 = vpop.xlane.xlu0 %1802  ;;  %v1817_v39 = vmul.f32 %v4209_v29, %v4209_v29 }
 0x6b3   :  { %v1810_v33 = vmul.f32 0.0078125, %v1803_v56  ;;  %v1805_v35 = vpop.xlane.xlu1 %1804 }
 0x6b4   :  { %3556 = vrsqrt.f32 %v1839_v15  ;;  %v1811_v42 = vmul.f32 0.0078125, %v1805_v35  ;;  %v1834_v35 = vsub.f32 %v4134_v17, %v4207_v12  ;;  %v2031_v17 = vld [vmem:[%s4346_s5] sm:$0xff]  ;;  %v3592_v12 = vld [vmem:[%s4348_s7 + $0x8] sm:$0xff] }
 0x6b5   :  { %v3553_v43 = vpop.eup %3552  ;;  %v1822_v40 = vsub.f32 %v1810_v33, %v1816_v14  ;;  %3558 = vrsqrt.f32 %v1838_v59  ;;  %v1833_v59 = vsub.f32 %v4126_v0, %v4201_v62  ;;  %v1835_v0 = vsub.f32 %v4136_v22, %v4209_v29  ;;  %3078 = vmatprep.mubr.msk.f32.mxu1 %vm2051_vm11, %v2031_v17  ;;  %v3593_v29 = vld [vmem:[%s4348_s7 + $0x10] sm:$0xff] }
 0x6b6   :  { %v3555_v34 = vpop.eup %3554  ;;  %v1823_v2 = vsub.f32 %v1811_v42, %v1817_v39  ;;  %v1848_v41 = vmul.f32 %v3553_v43, %v4051_v30  ;;  %v3631_v22 = vmov 9  }
 0x6b7   :  { %v1828_v45 = vmax.f32 %v1822_v40, 0.0  ;;  %v1849_v24 = vmul.f32 %v3555_v34, %v4062_v5  ;;  %v1892_v11 = vpop.permute.xlu1 %1891 }
 0x6b8   :  { %v1829_v16 = vmax.f32 %v1823_v2, 0.0  ;;  %1856 = vperm.xlu0 %3525, %v1848_v41   ;;  %v2179_v41 = vld [vmem:[%s4347_s6 + $0x10] sm:$0xff] }
 0x6b9   :  { %v1840_v46 = vadd.f32 1e-05, %v1828_v45  ;;  %1861 = vperm.xlu1 %3524, %v1849_v24  }
 0x6ba   :  { %v1841_v23 = vadd.f32 1e-05, %v1829_v16 }
 0x6bb   :  { %3560 = vrsqrt.f32 %v1840_v46  ;;  %v1896_v13 = vpop.permute.xlu1 %1895 }
 0x6bc   :  { %3562 = vrsqrt.f32 %v1841_v23 }
 0x6be   :  { %v3557_v50 = vpop.eup %3556 }
 0x6bf   :  { %v1851_v51 = vmul.f32 %v3557_v50, %v4074_v6  ;;  %v3559_v54 = vpop.eup %3558  ;;  %v1900_v49 = vpop.permute.xlu1 %1899 }
 0x6c0   :  { %v1850_v57 = vmul.f32 %v3559_v54, %v4057_v44 }
 0x6c1   :  { %1871 = vperm.xlu1 %3524, %v1851_v51  }
 0x6c3   :  { %v1904_v25 = vpop.permute.xlu1 %1903 }
 0x6c5   :  { %v3561_v7 = vpop.eup %3560  ;;  %1866 = vperm.xlu1 %3524, %v1850_v57  }
 0x6c6   :  { %v3563_v47 = vpop.eup %3562  ;;  %v1852_v8 = vmul.f32 %v3561_v7, %v4081_v60 }
 0x6c7   :  { %v1853_v3 = vmul.f32 %v3563_v47, %v4068_v61 }
 0x6c9   :  { %1881 = vperm.xlu0 %3525, %v1853_v3   ;;  %1876 = vperm.xlu1 %3524, %v1852_v8  }
 0x6cd   :  { %3527 = vset.pattern.permute.xlu0 %v3623_v36  ;;  %3526 = vset.pattern.permute.xlu1 %v3623_v36  ;;  %v1831_v36 = vsub.f32 %v4114_v48, %v4191_v38 }
 0x6ce   :  { %1911 = vperm.xlu0 %3527, %v4068_v61   ;;  %1907 = vperm.xlu1 %3526, %v4081_v60  }
 0x6d2   :  { %3528 = vset.pattern.permute.xlu1 %v3629_v32  ;;  %3529 = vset.pattern.permute.xlu0 %v3631_v22 }
 0x6d3   :  { %2036 = vperm.xlu1 %3528, %v4001_v9   ;;  %2154 = vperm.xlu0 %3529, %v4001_v9  }
 0x6d7   :  { %2040 = vperm.xlu1 %3528, %v3958_v58   ;;  %3532 = vset.pattern.permute.xlu0 %v3629_v32 }
 0x6d8   :  { %2048 = vperm.xlu0 %3532, %v4014_v10  }
 0x6db   :  { %3530 = vset.pattern.permute.xlu1 %v3631_v22 }
 0x6dc   :  { %2158 = vperm.xlu1 %3530, %v3592_v12   ;;  %3534 = vset.pattern.permute.xlu0 %v3625_v63 }
 0x6dd   :  { %2200 = vperm.xlu0 %3534, %v4081_v60  }
 0x6e0   :  { %3531 = vset.pattern.permute.xlu1 %v3629_v32 }
 0x6e1   :  { %2044 = vperm.xlu1 %3531, %v3593_v29   ;;  %2184 = vperm.xlu0 %3534, %v4051_v30  }
 0x6e5   :  { %3533 = vset.pattern.permute.xlu1 %v3631_v22  ;;  %2192 = vperm.xlu0 %3534, %v4057_v44   ;;  %v2032_v44 = vld [vmem:[%s4346_s5 + $0x8] sm:$0xff] }
 0x6e6   :  { %2162 = vperm.xlu1 %3533, %v3593_v29  }
 0x6ea   :  { %2166 = vperm.xlu1 %3533, %v4014_v10  }
 0x6ee   :  { %3535 = vset.pattern.permute.xlu1 %v3625_v63 }
 0x6ef   :  { %2204 = vperm.xlu1 %3535, %v4068_v61   ;;  %v2034_v61 = vld [vmem:[%s4346_s5 + $0x18] sm:$0xff] }
 0x6f3   :  { %2196 = vperm.xlu1 %3535, %v4074_v6   ;;  %v2177_v6 = vld [vmem:[%s4347_s6] sm:$0xff] }
 0x6f7   :  { %2188 = vperm.xlu1 %3535, %v4062_v5   ;;  %v2033_v5 = vld [vmem:[%s4346_s5 + $0x10] sm:$0xff] }
 0x737   :  { %v1857_v4 = vpop.permute.xlu0 %1856 }
 0x738   :  { %v1884_v20 = vmul.f32 %v1857_v4, %v1830_v18  ;;  %v1862_v21 = vpop.permute.xlu1 %1861 }
 0x739   :  { %v1885_v28 = vmul.f32 %v1862_v21, %v1831_v36 }
 0x73a   :  { %v4238_v37 = vadd.f32 %v1892_v11, %v1884_v20 }
 0x73b   :  { %v4240_v31 = vadd.f32 %v1896_v13, %v1885_v28 }
 0x73c   :  { %3057 = vmatprep.mubr.f32.mxu0 %v4238_v37 }
 0x73d   :  { %3058 = vmatmul.mubr.f32.vlgmr.msra.gmra.mrb[26].mxu0 %v4240_v31 }
 0x740   :  { %v1872_v58 = vpop.permute.xlu1 %1871 }
 0x741   :  { %v1887_v1 = vmul.f32 %v1872_v58, %v1833_v59  ;;  %v2178_v58 = vld [vmem:[%s4347_s6 + $0x8] sm:$0xff]  ;;  %v2180_v59 = vld [vmem:[%s4347_s6 + $0x18] sm:$0xff] }
 0x743   :  { %v4250_v56 = vadd.f32 %v1904_v25, %v1887_v1  ;;  %v2182_v1 = vld [vmem:[%s4347_s6 + $0x28] sm:$0xff] }
 0x744   :  { %v1867_v48 = vpop.permute.xlu1 %1866 }
 0x745   :  { %v1886_v38 = vmul.f32 %v1867_v48, %v1832_v19  ;;  %v2181_v19 = vld [vmem:[%s4347_s6 + $0x20] sm:$0xff] }
 0x747   :  { %v4248_v15 = vadd.f32 %v1900_v49, %v1886_v38 }
 0x748   :  { %v1877_v14 = vpop.permute.xlu1 %1876  ;;  %v1882_v33 = vpop.permute.xlu0 %1881 }
 0x749   :  { %3060 = vmatprep.mubr.f32.mxu0 %v4248_v15  ;;  %v1888_v26 = vmul.f32 %v1877_v14, %v1834_v35  ;;  %v1889_v55 = vmul.f32 %v1882_v33, %v1835_v0 }
 0x74a   :  { %3061 = vmatmul.mubr.f32.gmra.mrb[28].mxu0 %v4250_v56 }
 0x74d   :  { %v1908_v62 = vpop.permute.xlu1 %1907  ;;  %v1912_v39 = vpop.permute.xlu0 %1911 }
 0x74e   :  { %v4258_v42 = vadd.f32 %v1908_v62, %v1888_v26  ;;  %v4260_v43 = vadd.f32 %v1912_v39, %v1889_v55 }
 0x750   :  { %3063 = vmatprep.mubr.f32.mxu0 %v4258_v42 }
 0x751   :  { %3064 = vmatmul.mubr.f32.gmra.mrb[30].mxu0 %v4260_v43 }
 0x752   :  { %3092 = vmatprep.mubr.msk.f32.mxu0 %vm1656_vm6, %v2177_v6  ;;  %v2037_v52 = vpop.permute.xlu1 %2036  ;;  %v2155_v53 = vpop.permute.xlu0 %2154 }
 0x756   :  { %v2041_v27 = vpop.permute.xlu1 %2040 }
 0x757   :  { %v2049_v54 = vpop.permute.xlu0 %2048 }
 0x75b   :  { %v2159_v45 = vpop.permute.xlu1 %2158 }
 0x75c   :  { %v2201_v38 = vpop.permute.xlu0 %2200 }
 0x760   :  { %v2045_v24 = vpop.permute.xlu1 %2044  ;;  %v2185_v33 = vpop.permute.xlu0 %2184 }
 0x764   :  { %v2193_v0 = vpop.permute.xlu0 %2192 }
 0x765   :  { %v2163_v16 = vpop.permute.xlu1 %2162 }
 0x769   :  { %v2167_v49 = vpop.permute.xlu1 %2166 }
 0x76e   :  { %v2205_v48 = vpop.permute.xlu1 %2204 }
 0x772   :  { %v2197_v14 = vpop.permute.xlu1 %2196 }
 0x776   :  { %v2189_v35 = vpop.permute.xlu1 %2188 }
 0x810   :  { %v3059_v32 = vpop.f32.mrb[26].mxu0 }
 0x811   :  { %v2002_v9 = vpop.f32.mrb[27].mxu0 }
 0x812   :  { %v3433_v40 = vpack.c.bf16 %v3059_v32, %v2002_v9 }
 0x814   :  { %3434 = vmatprep.subr.bf16.mxu1 %v3433_v40 }
 0x815   :  { %3436 = vmatpush3.bf16.msra.mxu1 %v3433_v40 }
 0x81d   :  { %v3062_v60 = vpop.f32.mrb[28].mxu0 }
 0x81e   :  { %v2012_v34 = vpop.f32.mrb[29].mxu0 }
 0x81f   :  { %v3437_v10 = vpack.c.bf16 %v3062_v60, %v2012_v34 }
 0x821   :  { %3438 = vmatprep.subr.bf16.mxu1 %v3437_v10 }
 0x822   :  { %3440 = vmatpush3.bf16.msra.mxu1 %v3437_v10 }
 0x824   :  { %v3065_v30 = vpop.f32.mrb[30].mxu0 }
 0x825   :  { %v2022_v63 = vpop.f32.mrb[31].mxu0 }
 0x826   :  { %v3441_v2 = vpack.c.bf16 %v3065_v30, %v2022_v63 }
 0x828   :  { %3442 = vmatprep.subr.bf16.mxu1 %v3441_v2 }
 0x829   :  { %3444 = vmatpush3.bf16.msra.mxu1 %v3441_v2 }
 0x82c   :  { %3079 = vmatmul.mubr.msk.f32.vlgmr.msra.gmra.mrb[20].mxu1 %vm2051_vm11, %v2032_v44 }
 0x82d   :  { %3081 = vmatprep.mubr.msk.f32.mxu1 %vm2051_vm11, %v2033_v5 }
 0x830   :  { %3082 = vmatmul.mubr.msk.f32.gmra.mrb[22].mxu1 %vm2051_vm11, %v2034_v61 }
 0x831   :  { %3095 = vmatprep.mubr.msk.f32.mxu1 %vm1656_vm6, %v2179_v41 }
 0x8ff   :  { %v3080_v46 = vpop.f32.mrb[20].mxu1 }
 0x900   :  { %v2136_v23 = vadd.f32 %v3080_v46, %v2041_v27  ;;  %v2130_v50 = vpop.f32.mrb[21].mxu1 }
 0x901   :  { %v2131_v51 = vadd.f32 %v2130_v50, %v2037_v52 }
 0x902   :  { %vm2150_vm12 = vcmp.ge.f32.partialorder %v2136_v23, 0.0  ;;  %v2170_v57 = vmul.f32 %v2159_v45, %v2136_v23 }
 0x903   :  { %vm2149_vm13 = vcmp.ge.f32.partialorder %v2131_v51, 0.0  ;;  %v2169_v7 = vmul.f32 %v2155_v53, %v2131_v51  ;;  %v3083_v47 = vpop.f32.mrb[22].mxu1 }
 0x904   :  { %v2174_v8 = vsel %vm2150_vm12, %v2136_v23, %v2170_v57  ;;  %v2146_v3 = vadd.f32 %v3083_v47, %v2049_v54  ;;  %v2140_v11 = vpop.f32.mrb[23].mxu1 }
 0x905   :  { %v2173_v13 = vsel %vm2149_vm13, %v2131_v51, %v2169_v7  ;;  %v2141_v25 = vadd.f32 %v2140_v11, %v2045_v24 }
 0x906   :  { %v3445_v18 = vpack.c.bf16 %v2174_v8, %v2173_v13  ;;  %vm2152_vm14 = vcmp.ge.f32.partialorder %v2146_v3, 0.0  ;;  %v2172_v4 = vmul.f32 %v2167_v49, %v2146_v3 }
 0x907   :  { %vm2151_vm15 = vcmp.ge.f32.partialorder %v2141_v25, 0.0  ;;  %v2171_v36 = vmul.f32 %v2163_v16, %v2141_v25 }
 0x908   :  { %v2176_v20 = vsel %vm2152_vm14, %v2146_v3, %v2172_v4  ;;  %3446 = vmatprep.subr.bf16.mxu0 %v3445_v18  ;;  %3453 = vmatprep.subr.bf16.mxu1 %v3445_v18 }
 0x909   :  { %v2175_v21 = vsel %vm2151_vm15, %v2141_v25, %v2171_v36  ;;  %3448 = vmatpush3.bf16.msra.mxu0 %v3445_v18  ;;  %3455 = vmatpush3.bf16.msra.mxu1 %v3445_v18 }
 0x90a   :  { %v3449_v28 = vpack.c.bf16 %v2176_v20, %v2175_v21 }
 0x90c   :  { %3450 = vmatprep.subr.bf16.mxu0 %v3449_v28  ;;  %3454 = vmatprep.subr.bf16.mxu1 %v3449_v28 }
 0x90d   :  { %3452 = vmatpush3.bf16.msra.mxu0 %v3449_v28  ;;  %3456 = vmatpush3.bf16.msra.mxu1 %v3449_v28 }
 0x910   :  { %3093 = vmatmul.mubr.msk.f32.vlgmr.msra.gmra.mrb[32].mxu0 %vm1656_vm6, %v2178_v58  ;;  %3096 = vmatmul.mubr.msk.f32.vlgmr.msra.gmra.mrb[24].mxu1 %vm1656_vm6, %v2180_v59 }
 0x911   :  { %3098 = vmatprep.mubr.msk.f32.mxu1 %vm1656_vm6, %v2181_v19 }
 0x914   :  { %3099 = vmatmul.mubr.msk.f32.gmra.mrb[26].mxu1 %vm1656_vm6, %v2182_v1 }
 0x9e3   :  { %v3094_v26 = vpop.f32.mrb[32].mxu0  ;;  %v3097_v55 = vpop.f32.mrb[24].mxu1 }
 0x9e4   :  { %v2297_v62 = vadd.f32 %v3094_v26, %v2189_v35  ;;  %v2307_v39 = vadd.f32 %v3097_v55, %v2197_v14  ;;  %v2291_v17 = vpop.f32.mrb[33].mxu0  ;;  %v2301_v22 = vpop.f32.mrb[25].mxu1 }
 0x9e5   :  { %v2292_v12 = vadd.f32 %v2291_v17, %v2185_v33  ;;  %v2302_v29 = vadd.f32 %v2301_v22, %v2193_v0 }
 0x9e6   :  { %v2413_v32 = vmul.f32 -1.442695, %v2297_v62  ;;  %v2415_v9 = vmul.f32 -1.442695, %v2307_v39 }
 0x9e7   :  { %v2412_v40 = vmul.f32 -1.442695, %v2292_v12  ;;  %v2414_v60 = vmul.f32 -1.442695, %v2302_v29  ;;  %v3100_v34 = vpop.f32.mrb[26].mxu1 }
 0x9e8   :  { %3564 = vpow2.f32 %v2413_v32  ;;  %v2317_v10 = vadd.f32 %v3100_v34, %v2205_v48  ;;  %v2311_v30 = vpop.f32.mrb[27].mxu1 }
 0x9e9   :  { %3566 = vpow2.f32 %v2415_v9  ;;  %v2312_v63 = vadd.f32 %v2311_v30, %v2201_v38 }
 0x9ea   :  { %3568 = vpow2.f32 %v2412_v40  ;;  %v2417_v2 = vmul.f32 -1.442695, %v2317_v10 }
 0x9eb   :  { %3570 = vpow2.f32 %v2414_v60  ;;  %v2416_v44 = vmul.f32 -1.442695, %v2312_v63 }
 0x9ec   :  { %3572 = vpow2.f32 %v2417_v2 }
 0x9ed   :  { %3574 = vpow2.f32 %v2416_v44 }
 0x9f2   :  { %v3565_v5 = vpop.eup %3564 }
 0x9f3   :  { %v3567_v61 = vpop.eup %3566  ;;  %v2339_v6 = vadd.f32 1.0, %v3565_v5 }
 0x9f4   :  { %v3569_v41 = vpop.eup %3568  ;;  %v2341_v52 = vadd.f32 1.0, %v3567_v61 }
 0x9f5   :  { %v3571_v27 = vpop.eup %3570  ;;  %3576 = vrcp.f32 %v2339_v6  ;;  %v2338_v16 = vadd.f32 1.0, %v3569_v41 }
 0x9f6   :  { %v3573_v45 = vpop.eup %3572  ;;  %3578 = vrcp.f32 %v2341_v52  ;;  %v2340_v24 = vadd.f32 1.0, %v3571_v27 }
 0x9f7   :  { %v3575_v53 = vpop.eup %3574  ;;  %v2343_v46 = vadd.f32 1.0, %v3573_v45 }
 0x9f8   :  { %3580 = vrcp.f32 %v2340_v24  ;;  %v2342_v23 = vadd.f32 1.0, %v3575_v53 }
 0x9f9   :  { %3582 = vrcp.f32 %v2343_v46 }
 0x9fa   :  { %3584 = vrcp.f32 %v2342_v23 }
 0x9fb   :  { %3586 = vrcp.f32 %v2338_v16 }
 0x9ff   :  { %v3577_v50 = vpop.eup %3576 }
 0xa00   :  { %v3579_v51 = vpop.eup %3578  ;;  %v2357_v47 = vmul.f32 %v3577_v50, %v4240_v31 }
 0xa01   :  { %v2359_v54 = vmul.f32 %v3579_v51, %v4250_v56 }
 0xa02   :  { %v3581_v57 = vpop.eup %3580 }
 0xa03   :  { %v3583_v7 = vpop.eup %3582  ;;  %v2375_v8 = vrot.slane %v2359_v54, 4  ;;  %v2358_v3 = vmul.f32 %v3581_v57, %v4248_v15 }
 0xa04   :  { %v3585_v11 = vpop.eup %3584  ;;  %v2361_v13 = vmul.f32 %v3583_v7, %v4260_v43 }
 0xa05   :  { %v3587_v49 = vpop.eup %3586  ;;  %v2377_v25 = vadd.f32 %v2375_v8, %v2357_v47  ;;  %v2378_v18 = vadd.f32 %v2375_v8, %v2358_v3  ;;  %v2360_v4 = vmul.f32 %v3585_v11, %v4258_v42 }
 0xa06   :  { %v2366_v36 = vrot.slane %v2361_v13, 4  ;;  %v2356_v15 = vmul.f32 %v3587_v49, %v4238_v37 }
 0xa07   :  { %2379 = vst [vmem:[%s4353_s12 - $0x4] sm:$0xf0] %v2377_v25  ;;  %2380 = vst [vmem:[%s4353_s12 + $0x4] sm:$0xf] %v2378_v18  ;;  %v2365_v31 = vrot.slane %v2360_v4, 4 }
 0xa08   :  { %v2371_v56 = vadd.f32 %v2366_v36, %v2357_v47 }
 0xa09   :  { %v2367_v43 = vsel %vm2364_vm0, %v2365_v31, %v2366_v36 }
 0xa0a   :  { %2373 = vst [vmem:[%s4352_s11 + $0x8] sm:$0xf] %v2371_v56  ;;  %v2370_v42 = vadd.f32 %v2367_v43, %v2356_v15 }
 0xa0c   :  { %2372 = vst [vmem:[%s4352_s11] sm:$0xff] %v2370_v42 }
 0xa0d   :  { %2389 = vsyncpa [#allocation3], 1 }

</bundles_post_ra>
